<compile_context>
chip_gen: v7x
topology: tpu7x:2x2x1
jax: 0.10.0
libtpu: 0.0.40
codegen_flags: <defaults>
</compile_context>

<pallas_src>
import functools
import math

import jax
import jax.numpy as jnp
import numpy as np
from jax.experimental import pallas as pl
from jax.experimental.pallas import tpu as pltpu


def _amsoftmax_kernel(x_ref, lbl_ref, w_ref, out_ref, *, sm, exp_neg_sm,
                      num_classes):
    # x_ref: (TN, Cp) features; lbl_ref: (TN, 1) int32;
    # w_ref: (Cp, NCp) L2-normalised weights pre-scaled by s (resident);
    # out_ref: (1, 128) f32 -> lane 0 = per-tile loss sum, lane 1 = valid count.
    x = x_ref[...].astype(jnp.float32)

    # L2-normalise features along channels.  rsqrt lowers to the EUP slot; one
    # Newton step restores full f32 accuracy.  1e-24 == torch clamp(1e-12)^2.
    ss = jnp.maximum(jnp.sum(x * x, axis=1, keepdims=True), 1e-24)
    inv = jax.lax.rsqrt(ss)
    inv = inv * (1.5 - 0.5 * ss * inv * inv)
    xn = (x * inv).astype(w_ref.dtype)

    # s * cos(theta): bf16 x bf16 -> f32 accumulation on the MXU (native rate).
    costh_s = jnp.dot(xn, w_ref[...], preferred_element_type=jnp.float32)  # (TN, NCp)

    lbl = lbl_ref[...]                                    # (TN, 1) int32
    valid = lbl != 255
    vmaskf = valid.astype(jnp.float32)
    lbl_safe = jnp.where(valid, lbl, 0)

    nc_pad = costh_s.shape[1]
    cls_ids = jax.lax.broadcasted_iota(jnp.int32, (1, nc_pad), 1)

    # Fused margin / padding / cross-entropy epilogue.
    # mx >= 0 because padded class columns of W are exactly zero -> logits 0.
    mx = jnp.max(costh_s, axis=1, keepdims=True)          # (TN, 1)
    e = jnp.exp(costh_s - mx)                             # (TN, NCp)
    e_lbl = jnp.sum(jnp.where(cls_ids == lbl_safe, e, 0.0),
                    axis=1, keepdims=True)                # (TN, 1)
    # Each padded column contributes exactly exp(-mx); the additive margin on
    # the label column is applied analytically to the denominator.  Assumes the
    # padded weight columns are exactly zero and exp(-2*s) stays normal (s~10).
    pad_corr = jnp.float32(nc_pad - num_classes) * jnp.exp(-mx)
    denom = (jnp.sum(e, axis=1, keepdims=True) - pad_corr
             + e_lbl * jnp.float32(exp_neg_sm - 1.0))
    # CE = logsumexp(logits) - logit[label] = log(denom) - log(e_lbl) + s*m
    per_px = (jnp.log(denom) - jnp.log(e_lbl) + jnp.float32(sm)) * vmaskf

    # One unmasked lane-dense store per step (independent per-tile partials).
    lane = jax.lax.broadcasted_iota(jnp.int32, (1, 128), 1)
    tile_sum = jnp.sum(per_px)
    tile_cnt = jnp.sum(vmaskf)
    out_ref[...] = jnp.where(lane == 0, tile_sum,
                             jnp.where(lane == 1, tile_cnt, 0.0))


def _round_up(v, mult):
    return ((v + mult - 1) // mult) * mult


def am_softmax_loss(x, lb, W, *, m=0.5, s=10.0, loss_weight=1.0,
                    tile_n=1024, use_bf16_matmul=True, features_bf16=False):
    """x: (B, C, H, W) f32, lb: (B, 1, H, W) int (255=ignore), W: (C, num_classes)."""
    B, C, H, Wd = x.shape
    num_classes = W.shape[1]
    mm_dtype = jnp.bfloat16 if use_bf16_matmul else jnp.float32
    feat_dtype = jnp.bfloat16 if features_bf16 else jnp.float32

    # ---- hoisted weight normalisation; fold the scale s into W (grid-invariant) ----
    Wf = W.astype(jnp.float32)
    w_nrm = jnp.maximum(jnp.sqrt(jnp.sum(Wf * Wf, axis=0, keepdims=True)), 1e-12)
    Wn = (Wf / w_nrm) * jnp.float32(s)

    # ---- lane-dense padding: C and num_classes up to multiples of 128 ----
    C_pad = _round_up(C, 128)
    NC_pad = _round_up(num_classes, 128)
    if C_pad != C or NC_pad != num_classes:
        Wn = jnp.pad(Wn, ((0, C_pad - C), (0, NC_pad - num_classes)))
    Wn = Wn.astype(mm_dtype)

    # NHWC flatten to (N, C), matching torch permute(0,2,3,1).view(-1, C).
    # TODO(synk): on v5e, avoid this repack by keeping NCHW and computing
    # costh^T = W^T @ x_tile inside the kernel (pixels in lanes).
    x2d = jnp.transpose(x, (0, 2, 3, 1)).reshape(-1, C).astype(jnp.float32)
    if C_pad != C:
        x2d = jnp.pad(x2d, ((0, 0), (0, C_pad - C)))
    x2d = x2d.astype(feat_dtype)
    lbl = lb.reshape(-1, 1).astype(jnp.int32)
    N = x2d.shape[0]

    # ---- generation-aware VMEM budget ----
    try:
        vmem_cap = int(pltpu.get_tpu_info().vmem_capacity_bytes)
    except Exception:
        vmem_cap = 64 * 1024 * 1024          # assume v7x per-TC VMEM if unknown
    budget = max(16 * 1024 * 1024, int(vmem_cap * 0.60))

    feat_b = jnp.dtype(feat_dtype).itemsize
    w_b = jnp.dtype(mm_dtype).itemsize
    feat_bufs = 3 if NC_pad <= 256 else 2    # deeper pipelining for small class counts
    w_bufs = 1                               # resident, single-buffered

    def _vmem_est(tn):
        return (feat_bufs * tn * C_pad * feat_b    # pipelined feature blocks
                + 2 * tn * 128 * 4                 # label blocks (lane-padded)
                + w_bufs * C_pad * NC_pad * w_b    # resident normalised W
                + 4 * tn * NC_pad * 4              # (TN, NCp) f32 intermediates
                + 2 * 8 * 128 * 4)                 # output partial blocks

    # ---- tile size: multiple of 128 (MXU M dim), clamped to N and VMEM budget ----
    tile_n = max(128, (int(tile_n) // 128) * 128)
    tile_n = min(tile_n, _round_up(N, 128))
    if N > 256:   # keep >= 2 tiles so both v7x TensorCores get work
        tile_n = min(tile_n, _round_up((N + 1) // 2, 128))
    while _vmem_est(tile_n) > budget and tile_n > 128:
        tile_n = max(128, (tile_n // 2) // 128 * 128)

    if _vmem_est(128) > budget:
        # TODO(synk): class-tiled online-softmax path for very large num_classes.
        raise NotImplementedError(
            f"AMSoftmax: resident weight block ({C_pad}x{NC_pad}) does not fit "
            f"the {budget}-byte VMEM budget on this TPU generation.")

    vmem_limit = int(min(max(2 * _vmem_est(tile_n), 32 * 1024 * 1024),
                         int(vmem_cap * 0.65)))

    n_pad = (-N) % tile_n
    if n_pad:
        x2d = jnp.pad(x2d, ((0, n_pad), (0, 0)))
        lbl = jnp.pad(lbl, ((0, n_pad), (0, 0)), constant_values=255)
    n_tiles = (N + n_pad) // tile_n

    kern = functools.partial(
        _amsoftmax_kernel,
        sm=float(s) * float(m),
        exp_neg_sm=float(math.exp(-float(s) * float(m))),
        num_classes=num_classes)

    def _call(use_pipeline_mode):
        x_kwargs, w_kwargs = {}, {}
        if use_pipeline_mode:
            w_kwargs = dict(pipeline_mode=pl.Buffered(1))       # grid-invariant W
            if NC_pad <= 256:
                x_kwargs = dict(pipeline_mode=pl.Buffered(3))   # hide feature DMA
        return pl.pallas_call(
            kern,
            out_shape=jax.ShapeDtypeStruct((n_tiles, 128), jnp.float32),
            grid_spec=pltpu.PrefetchScalarGridSpec(
                num_scalar_prefetch=0,
                grid=(n_tiles,),
                in_specs=[
                    pl.BlockSpec((tile_n, C_pad), lambda i: (i, 0), **x_kwargs),
                    pl.BlockSpec((tile_n, 1), lambda i: (i, 0)),
                    pl.BlockSpec((C_pad, NC_pad), lambda i: (0, 0), **w_kwargs),
                ],
                out_specs=pl.BlockSpec((1, 128), lambda i: (i, 0)),
            ),
            compiler_params=pltpu.CompilerParams(
                dimension_semantics=("parallel",),
                vmem_limit_bytes=vmem_limit),
        )(x2d, lbl, Wn)

    try:
        partials = _call(True)
    except Exception:
        # Fallback for JAX versions without pipeline_mode support on TPU
        # pallas_call: identical semantics, default double-buffered pipeline.
        partials = _call(False)

    loss_sum = jnp.sum(partials[:, 0])
    cnt = jnp.sum(partials[:, 1])
    # mean over non-ignored pixels (CrossEntropyLoss 'mean' with ignore_index)
    return loss_weight * loss_sum / jnp.maximum(cnt, 1.0)


def _reference_loss(x, lb, W, m, s, loss_weight):
    """Pure-JAX (f32) reference of the PyTorch forward."""
    B, C, H, Wd = x.shape
    xn = x / jnp.maximum(jnp.linalg.norm(x, axis=1, keepdims=True), 1e-12)
    xn = jnp.transpose(xn, (0, 2, 3, 1)).reshape(-1, C)
    wn = W / jnp.maximum(jnp.linalg.norm(W, axis=0, keepdims=True), 1e-12)
    costh = xn @ wn
    lbl = lb.reshape(-1)
    valid = lbl != 255
    lbl_safe = jnp.where(valid, lbl, 0)
    onehot = jax.nn.one_hot(lbl_safe, W.shape[1], dtype=jnp.float32)
    logits = s * (costh - m * onehot * valid[:, None].astype(jnp.float32))
    logp = jax.nn.log_softmax(logits, axis=-1)
    per = -jnp.sum(logp * onehot, axis=-1)
    return loss_weight * jnp.sum(per * valid) / jnp.maximum(jnp.sum(valid), 1)


if __name__ == "__main__":
    # small shapes consistent with the module: in_feats channels, spatial map + labels
    B, C, H, Wd = 2, 32, 8, 8
    num_classes = 4
    m, s, loss_weight = 0.5, 10.0, 1.0

    key = jax.random.PRNGKey(0)
    kx, kw, kl, ki = jax.random.split(key, 4)

    x = jax.random.normal(kx, (B, C, H, Wd), dtype=jnp.float32)

    # xavier_normal_(gain=1): std = sqrt(2 / (fan_in + fan_out))
    std = float(np.sqrt(2.0 / (C + num_classes)))
    W = std * jax.random.normal(kw, (C, num_classes), dtype=jnp.float32)

    # labels in [0, num_classes), with ~12% ignored (255)
    lb = jax.random.randint(kl, (B, 1, H, Wd), 0, num_classes, dtype=jnp.int32)
    ignore = jax.random.bernoulli(ki, 0.125, (B, 1, H, Wd))
    lb = jnp.where(ignore, jnp.int32(255), lb)

    loss = am_softmax_loss(x, lb, W, m=m, s=s, loss_weight=loss_weight)
    loss = jax.block_until_ready(loss)

    ref = _reference_loss(x, lb, W, m, s, loss_weight)
    # bf16 MXU path -> ~1e-3-level agreement with the pure-f32 reference.
    np.testing.assert_allclose(np.asarray(loss), np.asarray(ref),
                               rtol=5e-3, atol=5e-3)
    print("KERNEL_OK")
</pallas_src>

<mosaic_0001>
module attributes {stable_mosaic.version = 11 : i64} {
  func.func @_amsoftmax_kernel(%arg0: i32, %arg1: memref<128x128xf32, #tpu.memory_space<vmem>>, %arg2: memref<128x1xi32, #tpu.memory_space<vmem>>, %arg3: memref<128x128xbf16, #tpu.memory_space<vmem>>, %arg4: memref<1x128xf32, #tpu.memory_space<vmem>>) attributes {dimension_semantics = [#tpu.dimension_semantics<parallel>], iteration_bounds = array<i64: 1>, scalar_prefetch = 0 : i64, scratch_operands = 0 : i64, tpu.core_type = #tpu.core_type<tc>, window_params = [{transform_indices = @transform_0, window_bounds = array<i64: 128, 128>}, {transform_indices = @transform_1, window_bounds = array<i64: 128, 1>}, {pipeline_mode = #tpu.pipeline_mode<synchronous>, transform_indices = @transform_2, window_bounds = array<i64: 128, 128>}, {transform_indices = @transform_3, window_bounds = array<i64: 1, 128>}]} {
    %c0 = arith.constant 0 : index
    %c0_0 = arith.constant 0 : index
    %0 = vector.load %arg1[%c0, %c0_0] : memref<128x128xf32, #tpu.memory_space<vmem>>, vector<128x128xf32>
    %1 = arith.mulf %0, %0 : vector<128x128xf32>
    %cst = arith.constant dense<0.000000e+00> : vector<128xf32>
    %2 = vector.multi_reduction <add>, %1, %cst [1] : vector<128x128xf32> to vector<128xf32>
    %3 = vector.shape_cast %2 : vector<128xf32> to vector<128x1xf32>
    %cst_1 = arith.constant 1.000000e-24 : f32
    %4 = vector.broadcast %cst_1 : f32 to vector<128x1xf32>
    %5 = arith.maximumf %3, %4 : vector<128x1xf32>
    %6 = math.rsqrt %5 : vector<128x1xf32>
    %cst_2 = arith.constant 5.000000e-01 : f32
    %7 = vector.broadcast %cst_2 : f32 to vector<128x1xf32>
    %8 = arith.mulf %7, %5 : vector<128x1xf32>
    %9 = arith.mulf %8, %6 : vector<128x1xf32>
    %10 = arith.mulf %9, %6 : vector<128x1xf32>
    %cst_3 = arith.constant 1.500000e+00 : f32
    %11 = vector.broadcast %cst_3 : f32 to vector<128x1xf32>
    %12 = arith.subf %11, %10 : vector<128x1xf32>
    %13 = arith.mulf %6, %12 : vector<128x1xf32>
    %14 = vector.broadcast %13 : vector<128x1xf32> to vector<128x128xf32>
    %15 = arith.mulf %0, %14 : vector<128x128xf32>
    %16 = arith.truncf %15 : vector<128x128xf32> to vector<128x128xbf16>
    %c0_4 = arith.constant 0 : index
    %c0_5 = arith.constant 0 : index
    %17 = vector.load %arg3[%c0_4, %c0_5] : memref<128x128xbf16, #tpu.memory_space<vmem>>, vector<128x128xbf16>
    %cst_6 = arith.constant dense<0.000000e+00> : vector<128x128xf32>
    %18 = tpu.matmul %16, %17, %cst_6 {dimension_numbers = #tpu.dot_dimension_numbers<[1], [0], [0], [1], [0, 0, 1, 1], [], []>} : vector<128x128xbf16>, vector<128x128xbf16>, vector<128x128xf32> -> vector<128x128xf32>
    %c0_7 = arith.constant 0 : index
    %c0_8 = arith.constant 0 : index
    %19 = vector.load %arg2[%c0_7, %c0_8] : memref<128x1xi32, #tpu.memory_space<vmem>>, vector<128x1xi32>
    %c255_i32 = arith.constant 255 : i32
    %20 = vector.broadcast %c255_i32 : i32 to vector<128x1xi32>
    %21 = arith.cmpi ne, %19, %20 : vector<128x1xi32>
    %22 = arith.extui %21 : vector<128x1xi1> to vector<128x1xi32>
    %23 = arith.sitofp %22 : vector<128x1xi32> to vector<128x1xf32>
    %c0_i32 = arith.constant 0 : i32
    %24 = vector.broadcast %c0_i32 : i32 to vector<128x1xi32>
    %25 = arith.select %21, %19, %24 : vector<128x1xi1>, vector<128x1xi32>
    %26 = tpu.iota {dimensions = array<i32: 1>} : vector<1x128xi32>
    %cst_9 = arith.constant dense<0xFF800000> : vector<128xf32>
    %27 = vector.multi_reduction <maximumf>, %18, %cst_9 [1] : vector<128x128xf32> to vector<128xf32>
    %28 = vector.shape_cast %27 : vector<128xf32> to vector<128x1xf32>
    %29 = vector.broadcast %28 : vector<128x1xf32> to vector<128x128xf32>
    %30 = arith.subf %18, %29 : vector<128x128xf32>
    %31 = math.exp %30 : vector<128x128xf32>
    %32 = vector.broadcast %26 : vector<1x128xi32> to vector<128x128xi32>
    %33 = vector.broadcast %25 : vector<128x1xi32> to vector<128x128xi32>
    %34 = arith.cmpi eq, %32, %33 : vector<128x128xi32>
    %cst_10 = arith.constant 0.000000e+00 : f32
    %35 = vector.broadcast %cst_10 : f32 to vector<128x128xf32>
    %36 = arith.select %34, %31, %35 : vector<128x128xi1>, vector<128x128xf32>
    %cst_11 = arith.constant dense<0.000000e+00> : vector<128xf32>
    %37 = vector.multi_reduction <add>, %36, %cst_11 [1] : vector<128x128xf32> to vector<128xf32>
    %38 = vector.shape_cast %37 : vector<128xf32> to vector<128x1xf32>
    %cst_12 = arith.constant 0.000000e+00 : f32
    %39 = vector.broadcast %cst_12 : f32 to vector<128x1xf32>
    %40 = arith.subf %39, %28 : vector<128x1xf32>
    %41 = math.exp %40 : vector<128x1xf32>
    %cst_13 = arith.constant 1.240000e+02 : f32
    %42 = vector.broadcast %cst_13 : f32 to vector<128x1xf32>
    %43 = arith.mulf %42, %41 : vector<128x1xf32>
    %cst_14 = arith.constant dense<0.000000e+00> : vector<128xf32>
    %44 = vector.multi_reduction <add>, %31, %cst_14 [1] : vector<128x128xf32> to vector<128xf32>
    %45 = vector.shape_cast %44 : vector<128xf32> to vector<128x1xf32>
    %46 = arith.subf %45, %43 : vector<128x1xf32>
    %cst_15 = arith.constant -0.993262052 : f32
    %47 = vector.broadcast %cst_15 : f32 to vector<128x1xf32>
    %48 = arith.mulf %38, %47 : vector<128x1xf32>
    %49 = arith.addf %46, %48 : vector<128x1xf32>
    %50 = math.log %49 : vector<128x1xf32>
    %51 = math.log %38 : vector<128x1xf32>
    %52 = arith.subf %50, %51 : vector<128x1xf32>
    %cst_16 = arith.constant 5.000000e+00 : f32
    %53 = vector.broadcast %cst_16 : f32 to vector<128x1xf32>
    %54 = arith.addf %52, %53 : vector<128x1xf32>
    %55 = arith.mulf %54, %23 : vector<128x1xf32>
    %56 = tpu.iota {dimensions = array<i32: 1>} : vector<1x128xi32>
    %57 = vector.shape_cast %55 : vector<128x1xf32> to vector<1x128x1xf32>
    %cst_17 = arith.constant dense<0.000000e+00> : vector<1xf32>
    %58 = vector.multi_reduction <add>, %57, %cst_17 [1, 2] : vector<1x128x1xf32> to vector<1xf32>
    %59 = vector.shape_cast %58 : vector<1xf32> to vector<1x1x1xf32>
    %60 = vector.extract %59[0, 0, 0] : f32 from vector<1x1x1xf32>
    %61 = vector.shape_cast %23 : vector<128x1xf32> to vector<1x128x1xf32>
    %cst_18 = arith.constant dense<0.000000e+00> : vector<1xf32>
    %62 = vector.multi_reduction <add>, %61, %cst_18 [1, 2] : vector<1x128x1xf32> to vector<1xf32>
    %63 = vector.shape_cast %62 : vector<1xf32> to vector<1x1x1xf32>
    %64 = vector.extract %63[0, 0, 0] : f32 from vector<1x1x1xf32>
    %c0_i32_19 = arith.constant 0 : i32
    %65 = vector.broadcast %c0_i32_19 : i32 to vector<1x128xi32>
    %66 = arith.cmpi eq, %56, %65 : vector<1x128xi32>
    %c1_i32 = arith.constant 1 : i32
    %67 = vector.broadcast %c1_i32 : i32 to vector<1x128xi32>
    %68 = arith.cmpi eq, %56, %67 : vector<1x128xi32>
    %cst_20 = arith.constant 0.000000e+00 : f32
    %69 = vector.broadcast %64 : f32 to vector<1x128xf32>
    %70 = vector.broadcast %cst_20 : f32 to vector<1x128xf32>
    %71 = arith.select %68, %69, %70 : vector<1x128xi1>, vector<1x128xf32>
    %72 = vector.broadcast %60 : f32 to vector<1x128xf32>
    %73 = arith.select %66, %72, %71 : vector<1x128xi1>, vector<1x128xf32>
    %c0_21 = arith.constant 0 : index
    %c0_22 = arith.constant 0 : index
    %74 = vector.load %arg4[%c0_21, %c0_22] : memref<1x128xf32, #tpu.memory_space<vmem>>, vector<1x128xf32>
    tpu.vector_store %arg4[%c0_21, %c0_22], %73 {strides = array<i32>} : memref<1x128xf32, #tpu.memory_space<vmem>>, vector<1x128xf32>,
    return
  }
  func.func @transform_0(%arg0: i32) -> (i32, i32) {
    %c0_i32 = arith.constant 0 : i32
    %c0_i32_0 = arith.constant 0 : i32
    return %arg0, %c0_i32 : i32, i32
  }
  func.func @transform_1(%arg0: i32) -> (i32, i32) {
    %c0_i32 = arith.constant 0 : i32
    %c0_i32_0 = arith.constant 0 : i32
    return %arg0, %c0_i32 : i32, i32
  }
  func.func @transform_2(%arg0: i32) -> (i32, i32) {
    %c0_i32 = arith.constant 0 : i32
    %c0_i32_0 = arith.constant 0 : i32
    %c0_i32_1 = arith.constant 0 : i32
    return %c0_i32, %c0_i32_0 : i32, i32
  }
  func.func @transform_3(%arg0: i32) -> (i32, i32) {
    %c0_i32 = arith.constant 0 : i32
    %c0_i32_0 = arith.constant 0 : i32
    return %arg0, %c0_i32 : i32, i32
  }
}

</mosaic_0001>

<bundles_post_ra>
// kernel: tpu_custom_call.1
= control target key start
LH: loop header
LB: loop body
LE: loop exit
PB: predicated region body
PF: predicated region fallthrough
CT: control target
= control target key end

     0   :  { %8 = vsyncpa [#allocation3], 0  ;;  %s2012_s0 = inlined_call_operand.vmem [shape: f32[128,128], index: 0, kind: input, shape index: {}]   ;;  %s2013_s1 = inlined_call_operand.vmem [shape: s32[128,1], index: 1, kind: input, shape index: {}]   ;;  %s2014_s2 = inlined_call_operand.hbm [shape: bf16[128,128], index: 2, kind: input, shape index: {}]   ;;  %s2015_s3 = inlined_call_operand.hbm [shape: f32[1,128], index: 3, kind: output, shape index: {}]  }
   0x1   :  { %9 = vsyncpa [#allocation4], 0  ;;  %s1340_s12 = smov [#allocation2]   ;;  %s1292_s16 = scalar_lea.hbm %s2014_s2, 1024 }
   0x2   :  { %s19_s13 = sshll.u32 %s1340_s12, 4  ;;  %p1293_p0 = scmp.ne.s32.totalorder %s2014_s2, %s1292_s16  ;;  %s20_s13 = int_to_ptr.vmem [resolvable:$true] %s19_s13 }
   0x3   :  { %p1296_p1 = scmp.lt.u32.totalorder %s1292_s16, %s2014_s2 }
   0x5   :  { %p1298_p2 = pnand %p1296_p1, %p1293_p0 }
   0x7   :  { %1301 = shalt.err (!%p1298_p2)
}
   0x8   :  { %s1302_s21 = scalar_lea.vmem %s20_s13, 1024  ;;  %p1307_p4 = scmp.lt.s32.totalorder %s20_s13, %s20_s13 }
   0x9   :  { %p1303_p3 = scmp.ne.s32.totalorder %s20_s13, %s1302_s21  ;;  %p1308_p5 = scmp.lt.s32.totalorder %s1302_s21, %s1302_s21 }
   0xb   :  { %p1309_p6 = por %p1308_p5, %p1307_p4 }
   0xd   :  { %p1310_p7 = pnand %p1309_p6, %p1303_p3 }
   0xf   :  { %1313 = shalt.err (!%p1310_p7)
}
  0x10   :  { %s1341_s22 = smov 64   ;;  %s1342_s23 = smov 4  }
  0x11   :  { %25 = dma.hbm_to_vmem [thread:$0]  %s2014_s2, 1024, %s20_s13, [#allocation3], %s1341_s22, %s1341_s22, %s1342_s23  }
  0x12   :  { %1336 = dma.done.wait [#allocation3], 1024  }
  0x13   :  { %1337 = vsyncadd [#allocation3], 4294966272  ;;  %v1381_v0 = vld [vmem:[%s2012_s0 + $0x10] sm:$0xff]  ;;  %v1386_v1 = vld [vmem:[%s2012_s0] sm:$0xff]  ;;  %v1343_v42 = vmov 0   ;;  %s1345_s2 = smov [#allocation5]  }
  0x14   :  { %v1391_v2 = vld [vmem:[%s2012_s0 + $0x18] sm:$0xff]  ;;  %v48_v3 = vmul.f32 %v1381_v0, %v1381_v0  ;;  %v46_v4 = vmul.f32 %v1386_v1, %v1386_v1  ;;  %v1400_v5 = vld [vmem:[%s2012_s0 + $0x8] sm:$0xff]  ;;  %v1414_v9 = vld [vmem:[%s2012_s0 + $0x20] sm:$0xff]  ;;  %1123 = vset.pattern.permute.xlu1 %v1343_v42  ;;  %1122 = vset.pattern.permute.xlu0 %v1343_v42  ;;  %s1015_s5 = sshll.u32 %s1345_s2, 4  ;;  %s1016_s5 = int_to_ptr.vmem [resolvable:$true] %s1015_s5 }
  0x15   :  { %v49_v6 = vmul.f32 %v1391_v2, %v1391_v2  ;;  %v47_v7 = vmul.f32 %v1400_v5, %v1400_v5  ;;  %v1409_v8 = vld [vmem:[%s2012_s0 + $0x28] sm:$0xff]  ;;  %v1419_v10 = vld [vmem:[%s2012_s0 + $0x38] sm:$0xff]  ;;  %v1424_v11 = vld [vmem:[%s2012_s0 + $0x30] sm:$0xff]  ;;  %v50_v14 = vmul.f32 %v1414_v9, %v1414_v9  ;;  %s1314_s7 = scalar_lea.vmem %s1016_s5, 16  ;;  %s1318_s8 = scalar_lea.vmem %s1016_s5, 32 }
  0x16   :  { %66 = vadd.xlane.f32.xlu1 %v48_v3  ;;  %62 = vadd.xlane.f32.xlu0 %v46_v4  ;;  %v1124_v12 = vld [vmem:[#allocation2] sm:$0xff]   ;;  %v51_v13 = vmul.f32 %v1409_v8, %v1409_v8  ;;  %v53_v15 = vmul.f32 %v1419_v10, %v1419_v10  ;;  %v52_v16 = vmul.f32 %v1424_v11, %v1424_v11  ;;  %v1437_v17 = vld [vmem:[%s2012_s0 + $0x48] sm:$0xff]  ;;  %v1451_v21 = vld [vmem:[%s2012_s0 + $0x58] sm:$0xff]  ;;  %p1315_p8 = scmp.ne.s32.totalorder %s1016_s5, %s1314_s7  ;;  %p1319_p9 = scmp.lt.s32.totalorder %s1016_s5, %s1016_s5 }
  0x17   :  { %1064 = vmatprep.subr.bf16.mxu0 %v1124_v12  ;;  %1096 = vmatprep.subr.bf16.mxu1 %v1124_v12  ;;  %v1442_v18 = vld [vmem:[%s2012_s0 + $0x40] sm:$0xff]  ;;  %v55_v19 = vmul.f32 %v1437_v17, %v1437_v17  ;;  %v1456_v22 = vld [vmem:[%s2012_s0 + $0x50] sm:$0xff]  ;;  %v1125_v23 = vld [vmem:[#allocation2 + $0x8] sm:$0xff]   ;;  %v57_v24 = vmul.f32 %v1451_v21, %v1451_v21  ;;  %p1320_p10 = scmp.lt.s32.totalorder %s1318_s8, %s1314_s7 }
  0x18   :  { %1065 = vmatpush3.bf16.msra.mxu0 %v1124_v12  ;;  %1104 = vmatpush3.bf16.msra.mxu1 %v1124_v12  ;;  %v54_v20 = vmul.f32 %v1442_v18, %v1442_v18  ;;  %v56_v25 = vmul.f32 %v1456_v22, %v1456_v22  ;;  %v1465_v26 = vld [vmem:[%s2012_s0 + $0x68] sm:$0xff]  ;;  %v1470_v27 = vld [vmem:[%s2012_s0 + $0x60] sm:$0xff]  ;;  %v1126_v28 = vld [vmem:[#allocation2 + $0x10] sm:$0xff]  }
  0x19   :  { %1066 = vmatprep.subr.bf16.mxu0 %v1125_v23  ;;  %1097 = vmatprep.subr.bf16.mxu1 %v1125_v23  ;;  %v59_v29 = vmul.f32 %v1465_v26, %v1465_v26  ;;  %v58_v30 = vmul.f32 %v1470_v27, %v1470_v27  ;;  %v1479_v31 = vld [vmem:[%s2012_s0 + $0x78] sm:$0xff]  ;;  %v1484_v32 = vld [vmem:[%s2012_s0 + $0x70] sm:$0xff]  ;;  %v1128_v36 = vld [vmem:[#allocation2 + $0x20] sm:$0xff]   ;;  %p1321_p11 = por %p1320_p10, %p1319_p9 }
  0x1a   :  { %68 = vadd.xlane.f32.xlu1 %v49_v6  ;;  %64 = vadd.xlane.f32.xlu0 %v47_v7  ;;  %v1127_v33 = vld [vmem:[#allocation2 + $0x18] sm:$0xff]   ;;  %v61_v34 = vmul.f32 %v1479_v31, %v1479_v31  ;;  %v60_v35 = vmul.f32 %v1484_v32, %v1484_v32  ;;  %v1129_v37 = vld [vmem:[#allocation2 + $0x28] sm:$0xff]   ;;  %v1130_v38 = vld [vmem:[#allocation2 + $0x30] sm:$0xff]  }
  0x1b   :  { %v1131_v39 = vld [vmem:[#allocation2 + $0x38] sm:$0xff]   ;;  %v1493_v40 = vld [vmem:[%s2013_s1 + $0x8] sm:$0xff]  ;;  %v1517_v46 = vld [vmem:[%s2013_s1 + $0x30] sm:$0xff]  ;;  %p1322_p12 = pnand %p1321_p11, %p1315_p8 }
  0x1c   :  { %1067 = vmatpush3.bf16.msra.mxu0 %v1125_v23  ;;  %1105 = vmatpush3.bf16.msra.mxu1 %v1125_v23  ;;  %v1498_v41 = vld [vmem:[%s2013_s1 + $0x18] sm:$0xff]  ;;  %vm408_vm0 = vcmp.ne.s32.totalorder %v1493_v40, 255  ;;  %v1508_v44 = vld [vmem:[%s2013_s1 + $0x28] sm:$0xff]  ;;  %v1522_v47 = vld [vmem:[%s2013_s1] sm:$0xff]  ;;  %vm413_vm3 = vcmp.ne.s32.totalorder %v1517_v46, 255 }
  0x1d   :  { %1068 = vmatprep.subr.bf16.mxu0 %v1126_v28  ;;  %1098 = vmatprep.subr.bf16.mxu1 %v1126_v28  ;;  %vm410_vm1 = vcmp.ne.s32.totalorder %v1498_v41, 255  ;;  %v456_v43 = vsel %vm408_vm0, %v1493_v40, 0  ;;  %vm412_vm2 = vcmp.ne.s32.totalorder %v1508_v44, 255  ;;  %v1527_v48 = vld [vmem:[%s2013_s1 + $0x10] sm:$0xff]  ;;  %v1536_v50 = vld [vmem:[%s2013_s1 + $0x38] sm:$0xff]  ;;  %vm407_vm4 = vcmp.ne.s32.totalorder %v1522_v47, 255 }
  0x1e   :  { %72 = vadd.xlane.f32.xlu1 %v51_v13  ;;  %70 = vadd.xlane.f32.xlu0 %v50_v14  ;;  %v458_v45 = vsel %vm410_vm1, %v1498_v41, 0  ;;  %v460_v49 = vsel %vm412_vm2, %v1508_v44, 0  ;;  %vm409_vm5 = vcmp.ne.s32.totalorder %v1527_v48, 255  ;;  %v455_v51 = vsel %vm407_vm4, %v1522_v47, 0  ;;  %v1546_v52 = vld [vmem:[%s2013_s1 + $0x20] sm:$0xff]  ;;  %v1564_v56 = vld [vmem:[%s2013_s1 + $0x48] sm:$0xff] }
  0x1f   :  { %v461_v53 = vsel %vm413_vm3, %v1517_v46, 0  ;;  %vm414_vm6 = vcmp.ne.s32.totalorder %v1536_v50, 255  ;;  %v457_v54 = vsel %vm409_vm5, %v1527_v48, 0  ;;  %v1558_v55 = vld [vmem:[%s2013_s1 + $0x40] sm:$0xff]  ;;  %vm411_vm7 = vcmp.ne.s32.totalorder %v1546_v52, 255  ;;  %v1576_v59 = vld [vmem:[%s2013_s1 + $0x50] sm:$0xff] }
  0x20   :  { %1069 = vmatpush3.bf16.msra.mxu0 %v1126_v28  ;;  %1106 = vmatpush3.bf16.msra.mxu1 %v1126_v28  ;;  %v462_v57 = vsel %vm414_vm6, %v1536_v50, 0  ;;  %vm415_vm8 = vcmp.ne.s32.totalorder %v1558_v55, 255  ;;  %v459_v58 = vsel %vm411_vm7, %v1546_v52, 0  ;;  %vm416_vm9 = vcmp.ne.s32.totalorder %v1564_v56, 255  ;;  %v1589_v62 = vld [vmem:[%s2013_s1 + $0x58] sm:$0xff]  ;;  %v1598_v3 = vld [vmem:[%s2013_s1 + $0x60] sm:$0xff] }
  0x21   :  { %1070 = vmatprep.subr.bf16.mxu0 %v1127_v33  ;;  %1099 = vmatprep.subr.bf16.mxu1 %v1127_v33  ;;  %v463_v60 = vsel %vm415_vm8, %v1558_v55, 0  ;;  %vm417_vm10 = vcmp.ne.s32.totalorder %v1576_v59, 255  ;;  %v464_v61 = vsel %vm416_vm9, %v1564_v56, 0  ;;  %vm418_vm11 = vcmp.ne.s32.totalorder %v1589_v62, 255  ;;  %v1607_v6 = vld [vmem:[%s2013_s1 + $0x68] sm:$0xff] }
  0x22   :  { %76 = vadd.xlane.f32.xlu1 %v53_v15  ;;  %74 = vadd.xlane.f32.xlu0 %v52_v16  ;;  %v465_v63 = vsel %vm417_vm10, %v1576_v59, 0  ;;  %v466_v4 = vsel %vm418_vm11, %v1589_v62, 0  ;;  %vm2021_vm12 = vcmp.ne.s32.totalorder %v1598_v3, 255  ;;  %2022 = vst [vmem:[#allocation8_spill] sm:$0xff] %v1607_v6  ;;  %vm2019_vm13 = vcmp.ne.s32.totalorder %v1607_v6, 255 }
  0x23   :  { %v467_v7 = vsel %vm2021_vm12, %v1598_v3, 0  ;;  %v468_v12 = vsel %vm2019_vm13, %v1607_v6, 0 }
  0x24   :  { %1071 = vmatpush3.bf16.msra.mxu0 %v1127_v33  ;;  %1107 = vmatpush3.bf16.msra.mxu1 %v1127_v33 }
  0x25   :  { %1072 = vmatprep.subr.bf16.mxu0 %v1128_v36  ;;  %1100 = vmatprep.subr.bf16.mxu1 %v1128_v36 }
  0x26   :  { %80 = vadd.xlane.f32.xlu1 %v55_v19  ;;  %78 = vadd.xlane.f32.xlu0 %v54_v20 }
  0x28   :  { %1073 = vmatpush3.bf16.msra.mxu0 %v1128_v36  ;;  %1108 = vmatpush3.bf16.msra.mxu1 %v1128_v36 }
  0x29   :  { %1074 = vmatprep.subr.bf16.mxu0 %v1129_v37  ;;  %1101 = vmatprep.subr.bf16.mxu1 %v1129_v37  ;;  %v2025_v59 = vld [vmem:[#allocation8_spill] sm:$0xff] }
  0x2a   :  { %84 = vadd.xlane.f32.xlu1 %v57_v24  ;;  %82 = vadd.xlane.f32.xlu0 %v56_v25 }
  0x2c   :  { %1075 = vmatpush3.bf16.msra.mxu0 %v1129_v37  ;;  %1109 = vmatpush3.bf16.msra.mxu1 %v1129_v37 }
  0x2d   :  { %1076 = vmatprep.subr.bf16.mxu0 %v1130_v38  ;;  %1102 = vmatprep.subr.bf16.mxu1 %v1130_v38 }
  0x2e   :  { %88 = vadd.xlane.f32.xlu1 %v59_v29  ;;  %86 = vadd.xlane.f32.xlu0 %v58_v30 }
  0x30   :  { %1077 = vmatpush3.bf16.msra.mxu0 %v1130_v38  ;;  %1110 = vmatpush3.bf16.msra.mxu1 %v1130_v38 }
  0x31   :  { %1078 = vmatprep.subr.bf16.mxu0 %v1131_v39  ;;  %1103 = vmatprep.subr.bf16.mxu1 %v1131_v39 }
  0x32   :  { %92 = vadd.xlane.f32.xlu1 %v61_v34  ;;  %90 = vadd.xlane.f32.xlu0 %v60_v35 }
  0x34   :  { %1079 = vmatpush3.bf16.msra.mxu0 %v1131_v39  ;;  %1111 = vmatpush3.bf16.msra.mxu1 %v1131_v39 }
  0x43   :  { %557 = vperm.xlu1 %1123, %v456_v43  }
  0x47   :  { %563 = vperm.xlu1 %1123, %v458_v45  }
  0x48   :  { %554 = vperm.xlu0 %1122, %v455_v51  }
  0x4b   :  { %569 = vperm.xlu1 %1123, %v460_v49  }
  0x4c   :  { %560 = vperm.xlu0 %1122, %v457_v54  }
  0x4f   :  { %572 = vperm.xlu1 %1123, %v461_v53  }
  0x50   :  { %566 = vperm.xlu0 %1122, %v459_v58  }
  0x53   :  { %575 = vperm.xlu1 %1123, %v462_v57  }
  0x54   :  { %581 = vperm.xlu0 %1122, %v464_v61  }
  0x57   :  { %578 = vperm.xlu1 %1123, %v463_v60  }
  0x5b   :  { %584 = vperm.xlu1 %1123, %v465_v63  }
  0x5f   :  { %587 = vperm.xlu1 %1123, %v466_v4  }
  0x63   :  { %590 = vperm.xlu1 %1123, %v467_v7  }
  0x67   :  { %593 = vperm.xlu1 %1123, %v468_v12  }
  0xa3   :  { %v67_v13 = vpop.xlane.xlu1 %66  ;;  %v63_v14 = vpop.xlane.xlu0 %62 }
  0xa4   :  { %v96_v15 = vmax.f32 %v67_v13, 1e-24  ;;  %v94_v16 = vmax.f32 %v63_v14, 1e-24 }
  0xa6   :  { %1132 = vrsqrt.f32 %v96_v15  ;;  %v128_v33 = vmul.f32 0.5, %v96_v15  ;;  %v126_v37 = vmul.f32 0.5, %v94_v16 }
  0xa7   :  { %1134 = vrsqrt.f32 %v94_v16  ;;  %v69_v19 = vpop.xlane.xlu1 %68  ;;  %v65_v20 = vpop.xlane.xlu0 %64 }
  0xa8   :  { %v97_v23 = vmax.f32 %v69_v19, 1e-24  ;;  %v95_v24 = vmax.f32 %v65_v20, 1e-24 }
  0xaa   :  { %1136 = vrsqrt.f32 %v97_v23  ;;  %v129_v51 = vmul.f32 0.5, %v97_v23  ;;  %v127_v58 = vmul.f32 0.5, %v95_v24 }
  0xab   :  { %1138 = vrsqrt.f32 %v95_v24  ;;  %v73_v25 = vpop.xlane.xlu1 %72  ;;  %v71_v28 = vpop.xlane.xlu0 %70 }
  0xac   :  { %v99_v29 = vmax.f32 %v73_v25, 1e-24  ;;  %v98_v30 = vmax.f32 %v71_v28, 1e-24 }
  0xae   :  { %1140 = vrsqrt.f32 %v99_v29  ;;  %v131_v14 = vmul.f32 0.5, %v99_v29  ;;  %v130_v15 = vmul.f32 0.5, %v98_v30 }
  0xaf   :  { %1142 = vrsqrt.f32 %v98_v30  ;;  %v77_v34 = vpop.xlane.xlu1 %76  ;;  %v75_v35 = vpop.xlane.xlu0 %74 }
  0xb0   :  { %v1133_v36 = vpop.eup %1132  ;;  %v101_v38 = vmax.f32 %v77_v34, 1e-24  ;;  %v100_v39 = vmax.f32 %v75_v35, 1e-24 }
  0xb1   :  { %v1135_v42 = vpop.eup %1134  ;;  %v144_v43 = vmul.f32 %v1133_v36, %v128_v33 }
  0xb2   :  { %v142_v45 = vmul.f32 %v1135_v42, %v126_v37  ;;  %1144 = vrsqrt.f32 %v101_v38  ;;  %v133_v33 = vmul.f32 0.5, %v101_v38 }
  0xb3   :  { %v160_v49 = vmul.f32 %v1133_v36, %v144_v43  ;;  %1146 = vrsqrt.f32 %v100_v39  ;;  %v81_v53 = vpop.xlane.xlu1 %80  ;;  %v79_v54 = vpop.xlane.xlu0 %78 }
  0xb4   :  { %v1137_v57 = vpop.eup %1136  ;;  %v103_v60 = vmax.f32 %v81_v53, 1e-24  ;;  %v102_v61 = vmax.f32 %v79_v54, 1e-24  ;;  %v158_v63 = vmul.f32 %v1135_v42, %v142_v45 }
  0xb5   :  { %v1139_v4 = vpop.eup %1138  ;;  %v176_v7 = vsub.f32 1.5, %v160_v49  ;;  %v145_v12 = vmul.f32 %v1137_v57, %v129_v51  ;;  %v132_v49 = vmul.f32 0.5, %v100_v39 }
  0xb6   :  { %v143_v13 = vmul.f32 %v1139_v4, %v127_v58  ;;  %1148 = vrsqrt.f32 %v103_v60  ;;  %v174_v23 = vsub.f32 1.5, %v158_v63  ;;  %v135_v51 = vmul.f32 0.5, %v103_v60 }
  0xb7   :  { %v161_v16 = vmul.f32 %v1137_v57, %v145_v12  ;;  %1150 = vrsqrt.f32 %v102_v61  ;;  %v85_v19 = vpop.xlane.xlu1 %84  ;;  %v83_v20 = vpop.xlane.xlu0 %82  ;;  %v192_v25 = vmul.f32 %v1133_v36, %v176_v7  ;;  %v134_v29 = vmul.f32 0.5, %v102_v61 }
  0xb8   :  { %v1141_v28 = vpop.eup %1140  ;;  %v105_v34 = vmax.f32 %v85_v19, 1e-24  ;;  %v104_v24 = vmax.f32 %v83_v20, 1e-24  ;;  %v159_v35 = vmul.f32 %v1139_v4, %v143_v13  ;;  %v190_v30 = vmul.f32 %v1135_v42, %v174_v23 }
  0xb9   :  { %v1143_v37 = vpop.eup %1142  ;;  %v177_v43 = vsub.f32 1.5, %v161_v16  ;;  %v147_v45 = vmul.f32 %v1141_v28, %v131_v14  ;;  %v208_v36 = vmul.f32 %v192_v25, %v1381_v0 }
  0xba   :  { %v146_v53 = vmul.f32 %v1143_v37, %v130_v15  ;;  %1152 = vrsqrt.f32 %v105_v34  ;;  %v175_v12 = vsub.f32 1.5, %v159_v35  ;;  %v137_v60 = vmul.f32 0.5, %v105_v34 }
  0xbb   :  { %v163_v54 = vmul.f32 %v1141_v28, %v147_v45  ;;  %1154 = vrsqrt.f32 %v104_v24  ;;  %v89_v58 = vpop.xlane.xlu1 %88  ;;  %v87_v63 = vpop.xlane.xlu0 %86  ;;  %v193_v20 = vmul.f32 %v1137_v57, %v177_v43  ;;  %v136_v42 = vmul.f32 0.5, %v104_v24 }
  0xbc   :  { %v1145_v38 = vpop.eup %1144  ;;  %v162_v7 = vmul.f32 %v1143_v37, %v146_v53  ;;  %v107_v19 = vmax.f32 %v89_v58, 1e-24  ;;  %v106_v13 = vmax.f32 %v87_v63, 1e-24  ;;  %v191_v15 = vmul.f32 %v1139_v4, %v175_v12 }
  0xbd   :  { %v1147_v16 = vpop.eup %1146  ;;  %v179_v14 = vsub.f32 1.5, %v163_v54  ;;  %v149_v39 = vmul.f32 %v1145_v38, %v133_v33  ;;  %v206_v35 = vmul.f32 %v190_v30, %v1386_v1  ;;  %v209_v57 = vmul.f32 %v193_v20, %v1391_v2 }
  0xbe   :  { %v178_v61 = vsub.f32 1.5, %v162_v7  ;;  %v148_v6 = vmul.f32 %v1147_v16, %v132_v49  ;;  %1156 = vrsqrt.f32 %v107_v19  ;;  %v207_v45 = vmul.f32 %v191_v15, %v1400_v5 }
  0xbf   :  { %v165_v23 = vmul.f32 %v1145_v38, %v149_v39  ;;  %1158 = vrsqrt.f32 %v106_v13  ;;  %v93_v0 = vpop.xlane.xlu1 %92  ;;  %v91_v33 = vpop.xlane.xlu0 %90  ;;  %v195_v24 = vmul.f32 %v1141_v28, %v179_v14  ;;  %v223_v7 = vpack.c.bf16 %v209_v57, %v208_v36 }
  0xc0   :  { %v1149_v25 = vpop.eup %1148  ;;  %v164_v53 = vmul.f32 %v1147_v16, %v148_v6  ;;  %v109_v43 = vmax.f32 %v93_v0, 1e-24  ;;  %v194_v54 = vmul.f32 %v1143_v37, %v178_v61  ;;  %v222_v49 = vpack.c.bf16 %v207_v45, %v206_v35 }
  0xc1   :  { %v1151_v34 = vpop.eup %1150  ;;  %v181_v4 = vsub.f32 1.5, %v165_v23  ;;  %v151_v58 = vmul.f32 %v1149_v25, %v135_v51  ;;  %v139_v1 = vmul.f32 0.5, %v107_v19  ;;  %v211_v6 = vmul.f32 %v195_v24, %v1409_v8 }
  0xc2   :  { %v180_v12 = vsub.f32 1.5, %v164_v53  ;;  %v150_v63 = vmul.f32 %v1151_v34, %v134_v29  ;;  %1160 = vrsqrt.f32 %v109_v43  ;;  %1080 = vmatprep.mubr.bf16.mxu0 %v222_v49  ;;  %v210_v5 = vmul.f32 %v194_v54, %v1414_v9 }
  0xc3   :  { %v108_v30 = vmax.f32 %v91_v33, 1e-24  ;;  %1081 = vmatmul.mubr.bf16.vlgmr.msra.gmra.mrb[0].mxu0 %v223_v7  ;;  %v197_v20 = vmul.f32 %v1145_v38, %v181_v4  ;;  %v167_v15 = vmul.f32 %v1149_v25, %v151_v58  ;;  %v138_v28 = vmul.f32 0.5, %v106_v13 }
  0xc4   :  { %v1153_v2 = vpop.eup %1152  ;;  %v196_v37 = vmul.f32 %v1147_v16, %v180_v12  ;;  %v166_v39 = vmul.f32 %v1151_v34, %v150_v63  ;;  %v224_v14 = vpack.c.bf16 %v211_v6, %v210_v5 }
  0xc5   :  { %v1155_v51 = vpop.eup %1154  ;;  %v153_v61 = vmul.f32 %v1153_v2, %v137_v60  ;;  %1162 = vrsqrt.f32 %v108_v30  ;;  %v213_v19 = vmul.f32 %v197_v20, %v1419_v10  ;;  %v183_v8 = vsub.f32 1.5, %v167_v15 }
  0xc6   :  { %v152_v29 = vmul.f32 %v1155_v51, %v136_v42  ;;  %v212_v36 = vmul.f32 %v196_v37, %v1424_v11  ;;  %v182_v9 = vsub.f32 1.5, %v166_v39  ;;  %1084 = vmatprep.mubr.bf16.mxu0 %v224_v14  ;;  %v141_v60 = vmul.f32 0.5, %v109_v43 }
  0xc7   :  { %v169_v23 = vmul.f32 %v1153_v2, %v153_v61  ;;  %v199_v13 = vmul.f32 %v1149_v25, %v183_v8  ;;  %v140_v24 = vmul.f32 0.5, %v108_v30 }
  0xc8   :  { %v1157_v35 = vpop.eup %1156  ;;  %v168_v45 = vmul.f32 %v1155_v51, %v152_v29  ;;  %v225_v16 = vpack.c.bf16 %v213_v19, %v212_v36  ;;  %v198_v38 = vmul.f32 %v1151_v34, %v182_v9 }
  0xc9   :  { %v1159_v0 = vpop.eup %1158  ;;  %v185_v53 = vsub.f32 1.5, %v169_v23  ;;  %v155_v57 = vmul.f32 %v1157_v35, %v139_v1  ;;  %v215_v10 = vmul.f32 %v199_v13, %v1437_v17  ;;  %v1683_v13 = vld [vmem:[%s2013_s1 + $0x78] sm:$0xff] }
  0xca   :  { %v184_v54 = vsub.f32 1.5, %v168_v45  ;;  %v154_v33 = vmul.f32 %v1159_v0, %v138_v28  ;;  %v214_v42 = vmul.f32 %v198_v38, %v1442_v18  ;;  %vm2017_vm15 = vcmp.ne.s32.totalorder %v1683_v13, 255 }
  0xcb   :  { %v171_v11 = vmul.f32 %v1157_v35, %v155_v57  ;;  %v201_v4 = vmul.f32 %v1153_v2, %v185_v53  ;;  %1085 = vmatmul.mubr.bf16.gmra.mrb[4].mxu0 %v225_v16 }
  0xcc   :  { %v1161_v58 = vpop.eup %1160  ;;  %v170_v49 = vmul.f32 %v1159_v0, %v154_v33  ;;  %v200_v12 = vmul.f32 %v1155_v51, %v184_v54  ;;  %v226_v7 = vpack.c.bf16 %v215_v10, %v214_v42  ;;  %v470_v33 = vsel %vm2017_vm15, %v1683_v13, 0  ;;  %v558_v42 = vpop.permute.xlu1 %557 }
  0xcd   :  { %v187_v63 = vsub.f32 1.5, %v171_v11  ;;  %v157_v34 = vmul.f32 %v1161_v58, %v141_v60  ;;  %v217_v1 = vmul.f32 %v201_v4, %v1451_v21  ;;  %v1677_v60 = vld [vmem:[%s2013_s1 + $0x70] sm:$0xff] }
  0xce   :  { %v186_v43 = vsub.f32 1.5, %v170_v49  ;;  %v216_v25 = vmul.f32 %v200_v12, %v1456_v22  ;;  %1088 = vmatprep.mubr.bf16.mxu1 %v226_v7  ;;  %vm2018_vm14 = vcmp.ne.s32.totalorder %v1677_v60, 255  ;;  %v1700_v49 = vpop.permute.xlu0 %554 }
  0xcf   :  { %v1163_v5 = vpop.eup %1162  ;;  %v173_v6 = vmul.f32 %v1161_v58, %v157_v34  ;;  %v203_v18 = vmul.f32 %v1157_v35, %v187_v63  ;;  %v469_v54 = vsel %vm2018_vm14, %v1677_v60, 0 }
  0xd0   :  { %v156_v37 = vmul.f32 %v1163_v5, %v140_v24  ;;  %v227_v17 = vpack.c.bf16 %v217_v1, %v216_v25  ;;  %v202_v2 = vmul.f32 %v1159_v0, %v186_v43  ;;  %v1692_v11 = vpop.permute.xlu1 %563 }
  0xd1   :  { %v189_v20 = vsub.f32 1.5, %v173_v6  ;;  %v219_v30 = vmul.f32 %v203_v18, %v1465_v26 }
  0xd2   :  { %v172_v39 = vmul.f32 %v1163_v5, %v156_v37  ;;  %1089 = vmatmul.mubr.bf16.vlgmr.msra.gmra.mrb[0].mxu1 %v227_v17  ;;  %v218_v15 = vmul.f32 %v202_v2, %v1470_v27  ;;  %v561_v12 = vpop.permute.xlu0 %560 }
  0xd3   :  { %v205_v51 = vmul.f32 %v1161_v58, %v189_v20 }
  0xd4   :  { %v188_v61 = vsub.f32 1.5, %v172_v39  ;;  %v228_v21 = vpack.c.bf16 %v219_v30, %v218_v15  ;;  %v1694_v10 = vpop.permute.xlu1 %569 }
  0xd5   :  { %v221_v22 = vmul.f32 %v205_v51, %v1479_v31 }
  0xd6   :  { %1092 = vmatprep.mubr.bf16.mxu1 %v228_v21  ;;  %v204_v28 = vmul.f32 %v1163_v5, %v188_v61  ;;  %v1706_v34 = vpop.permute.xlu0 %566 }
  0xd8   :  { %v220_v14 = vmul.f32 %v204_v28, %v1484_v32  ;;  %v1696_v4 = vpop.permute.xlu1 %572 }
  0xda   :  { %v229_v29 = vpack.c.bf16 %v221_v22, %v220_v14  ;;  %v1710_v1 = vpop.permute.xlu0 %581 }
  0xdc   :  { %1093 = vmatmul.mubr.bf16.gmra.mrb[4].mxu1 %v229_v29  ;;  %v1698_v58 = vpop.permute.xlu1 %575 }
  0xe0   :  { %v1702_v24 = vpop.permute.xlu1 %578 }
  0xe4   :  { %v1704_v63 = vpop.permute.xlu1 %584 }
  0xe8   :  { %v1708_v7 = vpop.permute.xlu1 %587 }
  0xec   :  { %v1715_v5 = vpop.permute.xlu1 %590 }
  0xf0   :  { %v1717_v18 = vpop.permute.xlu1 %593 }
 0x196   :  { %v1082_v36 = vpop.f32.mrb[0].mxu0 }
 0x197   :  { %477 = vmax.xlane.f32.xlu0 %v1082_v36  ;;  %v1632_v19 = vpop.f32.mrb[1].mxu0 }
 0x198   :  { %v1634_v26 = vpop.f32.mrb[2].mxu0 }
 0x199   :  { %479 = vmax.xlane.f32.xlu1 %v1634_v26  ;;  %v1637_v27 = vpop.f32.mrb[3].mxu0 }
 0x19e   :  { %v1639_v9 = vpop.f32.mrb[4].mxu0 }
 0x19f   :  { %v1641_v23 = vpop.f32.mrb[5].mxu0 }
 0x1a0   :  { %v1643_v8 = vpop.f32.mrb[6].mxu0 }
 0x1a1   :  { %v1645_v31 = vpop.f32.mrb[7].mxu0 }
 0x1a5   :  { %v1090_v32 = vpop.f32.mrb[0].mxu1 }
 0x1a6   :  { %493 = vmax.xlane.f32.xlu0 %v1090_v32  ;;  %v1647_v35 = vpop.f32.mrb[1].mxu1 }
 0x1a7   :  { %v1649_v45 = vpop.f32.mrb[2].mxu1 }
 0x1a8   :  { %495 = vmax.xlane.f32.xlu1 %v1649_v45  ;;  %v1652_v16 = vpop.f32.mrb[3].mxu1 }
 0x1aa   :  { %473 = vmax.xlane.f32.xlu0 %v1632_v19 }
 0x1ac   :  { %475 = vmax.xlane.f32.xlu1 %v1637_v27 }
 0x1ae   :  { %489 = vmax.xlane.f32.xlu0 %v1647_v35 }
 0x1af   :  { %v1657_v38 = vpop.f32.mrb[4].mxu1 }
 0x1b0   :  { %491 = vmax.xlane.f32.xlu1 %v1652_v16  ;;  %v1660_v0 = vpop.f32.mrb[5].mxu1 }
 0x1b1   :  { %v1662_v53 = vpop.f32.mrb[6].mxu1 }
 0x1b2   :  { %485 = vmax.xlane.f32.xlu0 %v1639_v9  ;;  %v1665_v57 = vpop.f32.mrb[7].mxu1 }
 0x1b4   :  { %501 = vmax.xlane.f32.xlu1 %v1657_v38 }
 0x1b6   :  { %481 = vmax.xlane.f32.xlu0 %v1641_v23 }
 0x1b8   :  { %497 = vmax.xlane.f32.xlu1 %v1660_v0 }
 0x1ba   :  { %503 = vmax.xlane.f32.xlu0 %v1662_v53 }
 0x1bc   :  { %487 = vmax.xlane.f32.xlu1 %v1643_v8 }
 0x1be   :  { %499 = vmax.xlane.f32.xlu0 %v1665_v57 }
 0x1c0   :  { %483 = vmax.xlane.f32.xlu1 %v1645_v31 }
 0x1d1   :  { %596 = vperm.xlu1 %1123, %v469_v54  }
 0x1d4   :  { %599 = vperm.xlu0 %1122, %v470_v33   ;;  %v471_v33 = vlaneseq }
 0x224   :  { %v1712_v43 = vpop.xlane.xlu0 %477 }
 0x225   :  { %v507_v25 = vsub.f32 %v1082_v36, %v1712_v43 }
 0x226   :  { %v1719_v37 = vpop.xlane.xlu1 %479 }
 0x227   :  { %v525_v6 = vmul.f32 1.442695, %v507_v25 }
 0x229   :  { %1164 = vpow2.f32 %v525_v6 }
 0x233   :  { %v1721_v17 = vpop.xlane.xlu0 %493  ;;  %v1165_v2 = vpop.eup %1164 }
 0x234   :  { %v515_v20 = vsub.f32 %v1090_v32, %v1721_v17  ;;  %733 = vadd.xlane.f32.xlu1 %v1165_v2 }
 0x235   :  { %v1724_v30 = vpop.xlane.xlu1 %495 }
 0x236   :  { %v541_v39 = vmul.f32 1.442695, %v515_v20 }
 0x237   :  { %v1726_v15 = vpop.xlane.xlu0 %473 }
 0x238   :  { %1166 = vpow2.f32 %v541_v39  ;;  %v505_v51 = vsub.f32 %v1632_v19, %v1726_v15  ;;  %v508_v19 = vsub.f32 %v1634_v26, %v1719_v37  ;;  %v1748_v39 = vand.u32 127, %v471_v33 }
 0x239   :  { %v1730_v61 = vpop.xlane.xlu1 %475 }
 0x23a   :  { %v521_v21 = vmul.f32 1.442695, %v505_v51  ;;  %v506_v28 = vsub.f32 %v1637_v27, %v1730_v61  ;;  %v527_v6 = vmul.f32 1.442695, %v508_v19  ;;  %vm602_vm15 = vcmp.eq.s32.totalorder %v1748_v39, %v558_v42 }
 0x23b   :  { %v1734_v22 = vpop.xlane.xlu0 %489  ;;  %vm603_vm14 = vcmp.eq.s32.totalorder %v1748_v39, %v561_v12  ;;  %vm611_vm13 = vcmp.eq.s32.totalorder %v1748_v39, %v1704_v63  ;;  %vm608_vm12 = vcmp.eq.s32.totalorder %v1748_v39, %v1698_v58 }
 0x23c   :  { %1168 = vpow2.f32 %v521_v21  ;;  %v523_v14 = vmul.f32 1.442695, %v506_v28  ;;  %v513_v29 = vsub.f32 %v1647_v35, %v1734_v22 }
 0x23d   :  { %v1738_v36 = vpop.xlane.xlu1 %491 }
 0x23e   :  { %1170 = vpow2.f32 %v523_v14  ;;  %v537_v32 = vmul.f32 1.442695, %v513_v29  ;;  %v514_v28 = vsub.f32 %v1652_v16, %v1738_v36 }
 0x23f   :  { %v1742_v54 = vpop.xlane.xlu0 %485 }
 0x240   :  { %1172 = vpow2.f32 %v537_v32  ;;  %v511_v42 = vsub.f32 %v1639_v9, %v1742_v54 }
 0x241   :  { %v1744_v25 = vpop.xlane.xlu1 %501  ;;  %1174 = vpow2.f32 %v527_v6  ;;  %v619_v6 = vsel %vm603_vm14, %v1165_v2, 0.0  ;;  %vm609_vm14 = vcmp.eq.s32.totalorder %v1748_v39, %v1702_v24 }
 0x242   :  { %v1167_v27 = vpop.eup %1166  ;;  %v533_v9 = vmul.f32 1.442695, %v511_v42 }
 0x243   :  { %749 = vadd.xlane.f32.xlu1 %v1167_v27  ;;  %v1746_v20 = vpop.xlane.xlu0 %481  ;;  %v627_v2 = vsel %vm611_vm13, %v1167_v27, 0.0  ;;  %vm605_vm13 = vcmp.eq.s32.totalorder %v1748_v39, %v1706_v34 }
 0x244   :  { %v509_v35 = vsub.f32 %v1641_v23, %v1746_v20 }
 0x245   :  { %v1752_v51 = vpop.xlane.xlu1 %497 }
 0x246   :  { %v1169_v21 = vpop.eup %1168  ;;  %v529_v26 = vmul.f32 1.442695, %v509_v35  ;;  %v539_v35 = vmul.f32 1.442695, %v514_v28 }
 0x247   :  { %729 = vadd.xlane.f32.xlu0 %v1169_v21  ;;  %v1756_v14 = vpop.xlane.xlu0 %503 }
 0x248   :  { %v1171_v29 = vpop.eup %1170  ;;  %1176 = vpow2.f32 %v529_v26 }
 0x249   :  { %v1760_v32 = vpop.xlane.xlu1 %487  ;;  %v618_v23 = vsel %vm602_vm15, %v1171_v29, 0.0  ;;  %vm601_vm15 = vcmp.eq.s32.totalorder %v1748_v39, %v1700_v49 }
 0x24a   :  { %2023 = vst [vmem:[#allocation9_spill] sm:$0xff] %v1760_v32  ;;  %v1173_v19 = vpop.eup %1172  ;;  %v512_v33 = vsub.f32 %v1643_v8, %v1760_v32  ;;  %v617_v32 = vsel %vm601_vm15, %v1169_v21, 0.0  ;;  %vm604_vm15 = vcmp.eq.s32.totalorder %v1748_v39, %v1692_v11  ;;  %v516_v11 = vsub.f32 %v1649_v45, %v1724_v30 }
 0x24b   :  { %637 = vadd.xlane.f32.xlu0 %v619_v6  ;;  %745 = vadd.xlane.f32.xlu1 %v1173_v19  ;;  %v1764_v16 = vpop.xlane.xlu0 %499  ;;  %v625_v49 = vsel %vm609_vm14, %v1173_v19, 0.0  ;;  %vm614_vm14 = vcmp.eq.s32.totalorder %v1748_v39, %v1717_v18 }
 0x24c   :  { %v535_v12 = vmul.f32 1.442695, %v512_v33  ;;  %v518_v26 = vsub.f32 %v1665_v57, %v1764_v16  ;;  %v1175_v33 = vpop.eup %1174  ;;  %v543_v18 = vmul.f32 1.442695, %v516_v11 }
 0x24d   :  { %v1774_v8 = vpop.xlane.xlu1 %483  ;;  %v620_v27 = vsel %vm604_vm15, %v1175_v33, 0.0  ;;  %vm610_vm15 = vcmp.eq.s32.totalorder %v1748_v39, %v1710_v1 }
 0x24e   :  { %1178 = vpow2.f32 %v535_v12  ;;  %v547_v28 = vmul.f32 1.442695, %v518_v26  ;;  %v510_v6 = vsub.f32 %v1645_v31, %v1774_v8 }
 0x24f   :  { %1180 = vpow2.f32 %v539_v35  ;;  %653 = vadd.xlane.f32.xlu0 %v627_v2  ;;  %633 = vadd.xlane.f32.xlu1 %v617_v32 }
 0x250   :  { %1182 = vpow2.f32 %v547_v28  ;;  %v531_v63 = vmul.f32 1.442695, %v510_v6  ;;  %v1344_v28 = vmov 0.0  }
 0x251   :  { %v1825_v47 = vsel %vm409_vm5, 1.0, %v1344_v28  ;;  %v1863_v44 = vsel %vm414_vm6, 1.0, %v1344_v28  ;;  %vm2027_vm5 = vcmp.ne.s32.totalorder %v1677_v60, 255  ;;  %vm2028_vm6 = vcmp.ne.s32.totalorder %v1683_v13, 255 }
 0x252   :  { %v1177_v57 = vpop.eup %1176  ;;  %1184 = vpow2.f32 %v531_v63  ;;  %v597_v63 = vpop.permute.xlu1 %596  ;;  %v667_v60 = vsub.f32 0.0, %v1712_v43  ;;  %v668_v13 = vsub.f32 0.0, %v1719_v37 }
 0x253   :  { %735 = vadd.xlane.f32.xlu1 %v1175_v33  ;;  %649 = vadd.xlane.f32.xlu0 %v625_v49  ;;  %v621_v31 = vsel %vm605_vm13, %v1177_v57, 0.0  ;;  %1186 = vpow2.f32 %v533_v9  ;;  %vm606_vm13 = vcmp.eq.s32.totalorder %v1748_v39, %v1694_v10  ;;  %v519_v10 = vsub.f32 %v1657_v38, %v1744_v25 }
 0x254   :  { %1188 = vpow2.f32 %v543_v18  ;;  %v1809_v38 = vsel %vm408_vm0, 1.0, %v1344_v28  ;;  %vm613_vm0 = vcmp.eq.s32.totalorder %v1748_v39, %v1715_v5 }
 0x255   :  { %v549_v1 = vmul.f32 1.442695, %v519_v10  ;;  %v1877_v10 = vsel %vm416_vm9, 1.0, %v1344_v28 }
 0x257   :  { %731 = vadd.xlane.f32.xlu1 %v1171_v29  ;;  %639 = vadd.xlane.f32.xlu0 %v620_v27 }
 0x258   :  { %v1179_v21 = vpop.eup %1178 }
 0x259   :  { %v1181_v24 = vpop.eup %1180  ;;  %v624_v32 = vsel %vm608_vm12, %v1179_v21, 0.0  ;;  %vm607_vm12 = vcmp.eq.s32.totalorder %v1748_v39, %v1696_v4 }
 0x25a   :  { %v1183_v35 = vpop.eup %1182  ;;  %v626_v42 = vsel %vm610_vm15, %v1181_v24, 0.0 }
 0x25b   :  { %747 = vadd.xlane.f32.xlu1 %v1181_v24  ;;  %635 = vadd.xlane.f32.xlu0 %v618_v23  ;;  %v1788_v34 = vsel %vm614_vm14, %v1183_v35, 0.0  ;;  %v517_v23 = vsub.f32 %v1660_v0, %v1752_v51  ;;  %v520_v0 = vsub.f32 %v1662_v53, %v1756_v14  ;;  %vm612_vm14 = vcmp.eq.s32.totalorder %v1748_v39, %v1708_v7 }
 0x25c   :  { %v1185_v19 = vpop.eup %1184  ;;  %v1814_v53 = vsel %vm407_vm4, 1.0, %v1344_v28  ;;  %vm615_vm4 = vcmp.eq.s32.totalorder %v1748_v39, %v597_v63  ;;  %v1840_v24 = vsel %vm411_vm7, 1.0, %v1344_v28  ;;  %vm1003_vm7 = vcmp.eq.s32.totalorder %v1748_v39, 1 }
 0x25d   :  { %v622_v58 = vsel %vm606_vm13, %v1185_v19, 0.0  ;;  %v1187_v29 = vpop.eup %1186  ;;  %v545_v45 = vmul.f32 1.442695, %v517_v23  ;;  %v551_v4 = vmul.f32 1.442695, %v520_v0  ;;  %vm921_vm13 = vcmask 7168  }
 0x25e   :  { %v623_v12 = vsel %vm607_vm12, %v1187_v29, 0.0  ;;  %v1189_v26 = vpop.eup %1188  ;;  %v963_v9 = vsel %vm921_vm13, %v1809_v38, 0.0  ;;  %v962_v7 = vsel %vm921_vm13, %v1814_v53, 0.0  ;;  %v969_v41 = vsel %vm921_vm13, %v1840_v24, 0.0 }
 0x25f   :  { %651 = vadd.xlane.f32.xlu0 %v626_v42  ;;  %741 = vadd.xlane.f32.xlu1 %v1187_v29  ;;  %1190 = vpow2.f32 %v545_v45  ;;  %v628_v6 = vsel %vm612_vm14, %v1189_v26, 0.0  ;;  %v964_v40 = vadd.f32 %v963_v9, %v962_v7  ;;  %v1856_v29 = vsel %vm413_vm3, 1.0, %v1344_v28 }
 0x260   :  { %1192 = vpow2.f32 %v549_v1  ;;  %v975_v23 = vsel %vm921_vm13, %v1863_v44, 0.0  ;;  %v979_v1 = vsel %vm921_vm13, %v1877_v10, 0.0  ;;  %v1884_v0 = vsel %vm417_vm10, 1.0, %v1344_v28 }
 0x261   :  { %1194 = vpow2.f32 %v551_v4  ;;  %v1891_v4 = vsel %vm418_vm11, 1.0, %v1344_v28  ;;  %vm2026_vm3 = vcmp.ne.s32.totalorder %v2025_v59, 255 }
 0x262   :  { %v1903_v9 = vsel %vm2026_vm3, 1.0, %v1344_v28 }
 0x263   :  { %645 = vadd.xlane.f32.xlu0 %v623_v12  ;;  %737 = vadd.xlane.f32.xlu1 %v1177_v57  ;;  %v965_v57 = vsel %vm921_vm13, %v1825_v47, 0.0  ;;  %v1870_v12 = vsel %vm415_vm8, 1.0, %v1344_v28  ;;  %v987_v63 = vsel %vm921_vm13, %v1903_v9, 0.0  ;;  %vm1002_vm8 = vcmp.eq.s32.totalorder %v1748_v39, 0 }
 0x264   :  { %v966_v5 = vadd.f32 %v965_v57, %v964_v40  ;;  %v977_v45 = vsel %vm921_vm13, %v1870_v12, 0.0 }
 0x267   :  { %743 = vadd.xlane.f32.xlu1 %v1179_v21  ;;  %641 = vadd.xlane.f32.xlu0 %v621_v31  ;;  %v1833_v31 = vsel %vm410_vm1, 1.0, %v1344_v28 }
 0x268   :  { %v967_v48 = vsel %vm921_vm13, %v1833_v31, 0.0 }
 0x269   :  { %v1191_v2 = vpop.eup %1190 }
 0x26a   :  { %v629_v33 = vsel %vm613_vm0, %v1191_v2, 0.0  ;;  %v1193_v49 = vpop.eup %1192 }
 0x26b   :  { %739 = vadd.xlane.f32.xlu1 %v1185_v19  ;;  %647 = vadd.xlane.f32.xlu0 %v624_v32  ;;  %v631_v27 = vsel %vm615_vm4, %v1193_v49, 0.0  ;;  %v1195_v21 = vpop.eup %1194  ;;  %v968_v32 = vadd.f32 %v967_v48, %v966_v5  ;;  %v1848_v19 = vsel %vm412_vm2, 1.0, %v1344_v28  ;;  %vm2024_vm2 = vcmp.ne.s32.totalorder %v1598_v3, 255 }
 0x26c   :  { %v971_v52 = vsel %vm921_vm13, %v1848_v19, 0.0  ;;  %v1917_v3 = vsel %vm2028_vm6, 1.0, %v1344_v28 }
 0x26d   :  { %v970_v11 = vadd.f32 %v969_v41, %v968_v32  ;;  %v991_v5 = vsel %vm921_vm13, %v1917_v3, 0.0  ;;  %v687_v41 = vmul.f32 1.442695, %v668_v13 }
 0x26f   :  { %751 = vadd.xlane.f32.xlu1 %v1189_v26  ;;  %643 = vadd.xlane.f32.xlu0 %v622_v58  ;;  %v972_v42 = vadd.f32 %v971_v52, %v970_v11  ;;  %v981_v26 = vsel %vm921_vm13, %v1884_v0, 0.0  ;;  %v666_v11 = vsub.f32 0.0, %v1730_v61 }
 0x273   :  { %753 = vadd.xlane.f32.xlu1 %v1191_v2  ;;  %655 = vadd.xlane.f32.xlu0 %v628_v6  ;;  %v983_v2 = vsel %vm921_vm13, %v1891_v4, 0.0  ;;  %v1898_v6 = vsel %vm2024_vm2, 1.0, %v1344_v28 }
 0x274   :  { %v985_v7 = vsel %vm921_vm13, %v1898_v6, 0.0 }
 0x277   :  { %657 = vadd.xlane.f32.xlu0 %v629_v33  ;;  %755 = vadd.xlane.f32.xlu1 %v1183_v35  ;;  %v600_v35 = vpop.permute.xlu0 %599  ;;  %v1912_v33 = vsel %vm2027_vm5, 1.0, %v1344_v28 }
 0x278   :  { %vm616_vm1 = vcmp.eq.s32.totalorder %v1748_v39, %v600_v35  ;;  %v685_v35 = vmul.f32 1.442695, %v667_v60 }
 0x279   :  { %v632_v58 = vsel %vm616_vm1, %v1195_v21, 0.0 }
 0x27b   :  { %661 = vadd.xlane.f32.xlu0 %v631_v27  ;;  %757 = vadd.xlane.f32.xlu1 %v1193_v49  ;;  %v989_v49 = vsel %vm921_vm13, %v1912_v33, 0.0 }
 0x27f   :  { %759 = vadd.xlane.f32.xlu1 %v1195_v21  ;;  %659 = vadd.xlane.f32.xlu0 %v1788_v34  ;;  %v973_v34 = vsel %vm921_vm13, %v1856_v29, 0.0  ;;  %v665_v21 = vsub.f32 0.0, %v1726_v15  ;;  %v673_v15 = vsub.f32 0.0, %v1734_v22 }
 0x280   :  { %v974_v18 = vadd.f32 %v973_v34, %v972_v42  ;;  %v675_v42 = vsub.f32 0.0, %v1721_v17  ;;  %v683_v34 = vmul.f32 1.442695, %v666_v11  ;;  %v670_v11 = vsub.f32 0.0, %v1774_v8 }
 0x281   :  { %v681_v32 = vmul.f32 1.442695, %v665_v21  ;;  %v697_v61 = vmul.f32 1.442695, %v673_v15 }
 0x282   :  { %v976_v46 = vadd.f32 %v975_v23, %v974_v18  ;;  %v674_v18 = vsub.f32 0.0, %v1738_v36 }
 0x283   :  { %663 = vadd.xlane.f32.xlu0 %v632_v58  ;;  %1196 = vpow2.f32 %v681_v32  ;;  %v676_v32 = vsub.f32 0.0, %v1724_v30 }
 0x284   :  { %v978_v50 = vadd.f32 %v977_v45, %v976_v46  ;;  %1198 = vpow2.f32 %v685_v35  ;;  %v671_v45 = vsub.f32 0.0, %v1742_v54 }
 0x285   :  { %1200 = vpow2.f32 %v687_v41 }
 0x286   :  { %v980_v55 = vadd.f32 %v979_v1, %v978_v50  ;;  %v701_v50 = vmul.f32 1.442695, %v675_v42  ;;  %1202 = vpow2.f32 %v683_v34  ;;  %v669_v1 = vsub.f32 0.0, %v1746_v20 }
 0x287   :  { %v693_v22 = vmul.f32 1.442695, %v671_v45 }
 0x288   :  { %v982_v56 = vadd.f32 %v981_v26, %v980_v55  ;;  %v699_v26 = vmul.f32 1.442695, %v674_v18  ;;  %1204 = vpow2.f32 %v701_v50  ;;  %v689_v54 = vmul.f32 1.442695, %v669_v1 }
 0x289   :  { %1206 = vpow2.f32 %v697_v61  ;;  %v677_v18 = vsub.f32 0.0, %v1752_v51  ;;  %v678_v50 = vsub.f32 0.0, %v1764_v16 }
 0x28a   :  { %v984_v62 = vadd.f32 %v983_v2, %v982_v56  ;;  %1208 = vpow2.f32 %v699_v26 }
 0x28b   :  { %1210 = vpow2.f32 %v693_v22  ;;  %v707_v16 = vmul.f32 1.442695, %v678_v50 }
 0x28c   :  { %v986_v40 = vadd.f32 %v985_v7, %v984_v62  ;;  %v2029_v62 = vld [vmem:[#allocation9_spill] sm:$0xff] }
 0x28d   :  { %v1197_v43 = vpop.eup %1196 }
 0x28e   :  { %v988_v57 = vadd.f32 %v987_v63, %v986_v40  ;;  %v1199_v46 = vpop.eup %1198  ;;  %v713_v55 = vmul.f32 124.0, %v1197_v43  ;;  %v672_v63 = vsub.f32 0.0, %v2029_v62  ;;  %v703_v43 = vmul.f32 1.442695, %v676_v32 }
 0x28f   :  { %v715_v17 = vmul.f32 124.0, %v1199_v46 }
 0x290   :  { %v990_v27 = vadd.f32 %v989_v49, %v988_v57  ;;  %v1201_v49 = vpop.eup %1200 }
 0x291   :  { %v716_v21 = vmul.f32 124.0, %v1201_v49  ;;  %v1203_v60 = vpop.eup %1202 }
 0x292   :  { %v992_v48 = vadd.f32 %v991_v5, %v990_v27  ;;  %v714_v42 = vmul.f32 124.0, %v1203_v60  ;;  %v1205_v15 = vpop.eup %1204 }
 0x293   :  { %v1207_v45 = vpop.eup %1206  ;;  %v723_v51 = vmul.f32 124.0, %v1205_v15 }
 0x294   :  { %993 = vadd.xlane.f32.xlu1 %v992_v48  ;;  %v695_v48 = vmul.f32 1.442695, %v672_v63  ;;  %v1209_v8 = vpop.eup %1208 }
 0x2c1   :  { %v734_v28 = vpop.xlane.xlu1 %733 }
 0x2c2   :  { %v763_v40 = vsub.f32 %v734_v28, %v715_v17 }
 0x2d0   :  { %v1927_v58 = vpop.xlane.xlu1 %749 }
 0x2d1   :  { %v771_v63 = vsub.f32 %v1927_v58, %v723_v51 }
 0x2d4   :  { %v730_v52 = vpop.xlane.xlu0 %729 }
 0x2d5   :  { %v761_v59 = vsub.f32 %v730_v52, %v713_v55  ;;  %v679_v52 = vsub.f32 0.0, %v1744_v25  ;;  %v691_v55 = vmul.f32 1.442695, %v670_v11  ;;  %v1211_v25 = vpop.eup %1210 }
 0x2d8   :  { %v1932_v23 = vpop.xlane.xlu1 %745  ;;  %v638_v37 = vpop.xlane.xlu0 %637 }
 0x2d9   :  { %v779_v36 = vmul.f32 -0.99326205, %v638_v37 }
 0x2db   :  { %v795_v27 = vadd.f32 %v779_v36, %v763_v40 }
 0x2dc   :  { %v634_v56 = vpop.xlane.xlu1 %633  ;;  %v1936_v2 = vpop.xlane.xlu0 %653 }
 0x2dd   :  { %v777_v7 = vmul.f32 -0.99326205, %v634_v56  ;;  %v787_v22 = vmul.f32 -0.99326205, %v1936_v2 }
 0x2df   :  { %v793_v57 = vadd.f32 %v777_v7, %v761_v59 }
 0x2e0   :  { %v736_v20 = vpop.xlane.xlu1 %735  ;;  %v1939_v5 = vpop.xlane.xlu0 %649 }
 0x2e1   :  { %1212 = vlog2.f32 %v793_v57  ;;  %v764_v28 = vsub.f32 %v736_v20, %v716_v21  ;;  %v785_v40 = vmul.f32 -0.99326205, %v1939_v5  ;;  %v719_v21 = vmul.f32 124.0, %v1211_v25 }
 0x2e2   :  { %1214 = vpow2.f32 %v689_v54  ;;  %v721_v54 = vmul.f32 124.0, %v1207_v45 }
 0x2e3   :  { %1216 = vlog2.f32 %v634_v56  ;;  %v705_v56 = vmul.f32 1.442695, %v677_v18 }
 0x2e4   :  { %v732_v35 = vpop.xlane.xlu1 %731  ;;  %v640_v13 = vpop.xlane.xlu0 %639  ;;  %1218 = vlog2.f32 %v795_v27  ;;  %v769_v27 = vsub.f32 %v1932_v23, %v721_v54 }
 0x2e5   :  { %v780_v41 = vmul.f32 -0.99326205, %v640_v13  ;;  %1220 = vpow2.f32 %v695_v48  ;;  %v762_v61 = vsub.f32 %v732_v35, %v714_v42  ;;  %v803_v48 = vadd.f32 %v787_v22, %v771_v63 }
 0x2e6   :  { %1222 = vlog2.f32 %v638_v37  ;;  %v709_v37 = vmul.f32 1.442695, %v679_v52  ;;  %v801_v11 = vadd.f32 %v785_v40, %v769_v27 }
 0x2e7   :  { %v796_v34 = vadd.f32 %v780_v41, %v764_v28  ;;  %1224 = vlog2.f32 %v640_v13  ;;  %v722_v28 = vmul.f32 124.0, %v1209_v8 }
 0x2e8   :  { %v1945_v30 = vpop.xlane.xlu1 %747  ;;  %v636_v46 = vpop.xlane.xlu0 %635 }
 0x2e9   :  { %1226 = vlog2.f32 %v796_v34  ;;  %v778_v1 = vmul.f32 -0.99326205, %v636_v46  ;;  %v770_v8 = vsub.f32 %v1945_v30, %v722_v28 }
 0x2ea   :  { %1228 = vlog2.f32 %v636_v46 }
 0x2eb   :  { %v794_v26 = vadd.f32 %v778_v1, %v762_v61  ;;  %v1213_v17 = vpop.eup %1212  ;;  %1230 = vpow2.f32 %v703_v43 }
 0x2ec   :  { %v742_v59 = vpop.xlane.xlu1 %741  ;;  %v1949_v36 = vpop.xlane.xlu0 %651  ;;  %v810_v49 = vmul.f32 0.6931472, %v1213_v17 }
 0x2ed   :  { %v1215_v7 = vpop.eup %1214  ;;  %1232 = vlog2.f32 %v794_v26  ;;  %v767_v52 = vsub.f32 %v742_v59, %v719_v21  ;;  %v786_v43 = vmul.f32 -0.99326205, %v1949_v36 }
 0x2ee   :  { %v1217_v62 = vpop.eup %1216  ;;  %1234 = vpow2.f32 %v691_v55  ;;  %v717_v23 = vmul.f32 124.0, %v1215_v7 }
 0x2ef   :  { %v1219_v57 = vpop.eup %1218  ;;  %1236 = vpow2.f32 %v709_v37  ;;  %v842_v13 = vmul.f32 0.6931472, %v1217_v62  ;;  %v802_v22 = vadd.f32 %v786_v43, %v770_v8 }
 0x2f0   :  { %v1221_v20 = vpop.eup %1220  ;;  %1238 = vpow2.f32 %v705_v56  ;;  %v738_v60 = vpop.xlane.xlu1 %737  ;;  %v814_v58 = vmul.f32 0.6931472, %v1219_v57 }
 0x2f1   :  { %v646_v32 = vpop.xlane.xlu0 %645  ;;  %v1223_v35 = vpop.eup %1222  ;;  %1240 = vpow2.f32 %v707_v16  ;;  %v873_v15 = vsub.f32 %v810_v49, %v842_v13  ;;  %v765_v55 = vsub.f32 %v738_v60, %v717_v23  ;;  %v720_v17 = vmul.f32 124.0, %v1221_v20 }
 0x2f2   :  { %v1225_v41 = vpop.eup %1224  ;;  %v783_v42 = vmul.f32 -0.99326205, %v646_v32  ;;  %1242 = vlog2.f32 %v1936_v2  ;;  %v846_v18 = vmul.f32 0.6931472, %v1223_v35  ;;  %v680_v20 = vsub.f32 0.0, %v1756_v14 }
 0x2f3   :  { %v1227_v34 = vpop.eup %1226  ;;  %1244 = vlog2.f32 %v803_v48  ;;  %v848_v2 = vmul.f32 0.6931472, %v1225_v41  ;;  %v889_v51 = vadd.f32 5.0, %v873_v15 }
 0x2f4   :  { %v816_v46 = vmul.f32 0.6931472, %v1227_v34  ;;  %v799_v45 = vadd.f32 %v783_v42, %v767_v52  ;;  %v744_v50 = vpop.xlane.xlu1 %743  ;;  %v1229_v1 = vpop.eup %1228  ;;  %1246 = vlog2.f32 %v1939_v5  ;;  %v875_v26 = vsub.f32 %v814_v58, %v846_v18 }
 0x2f5   :  { %v642_v61 = vpop.xlane.xlu0 %641  ;;  %v1231_v37 = vpop.eup %1230  ;;  %1248 = vlog2.f32 %v801_v11  ;;  %v844_v63 = vmul.f32 0.6931472, %v1229_v1  ;;  %v768_v40 = vsub.f32 %v744_v50, %v720_v17  ;;  %v905_v13 = vmul.f32 %v1814_v53, %v889_v51 }
 0x2f6   :  { %v781_v25 = vmul.f32 -0.99326205, %v642_v61  ;;  %1250 = vlog2.f32 %v642_v61  ;;  %v876_v16 = vsub.f32 %v816_v46, %v848_v2  ;;  %v891_v27 = vadd.f32 5.0, %v875_v26 }
 0x2f7   :  { %v1233_v56 = vpop.eup %1232  ;;  %1252 = vlog2.f32 %v799_v45  ;;  %v711_v14 = vmul.f32 1.442695, %v680_v20  ;;  %v724_v18 = vmul.f32 124.0, %v1231_v37  ;;  %v922_v45 = vsel %vm921_vm13, %v905_v13, 0.0 }
 0x2f8   :  { %v797_v59 = vadd.f32 %v781_v25, %v765_v55  ;;  %v1235_v7 = vpop.eup %1234  ;;  %v812_v62 = vmul.f32 0.6931472, %v1233_v56  ;;  %v740_v5 = vpop.xlane.xlu1 %739  ;;  %v892_v28 = vadd.f32 5.0, %v876_v16  ;;  %v907_v43 = vmul.f32 %v1825_v47, %v891_v27 }
 0x2f9   :  { %v648_v54 = vpop.xlane.xlu0 %647  ;;  %v1958_v30 = vpop.eup %1236  ;;  %v718_v60 = vmul.f32 124.0, %v1235_v7 }
 0x2fa   :  { %1254 = vlog2.f32 %v797_v59  ;;  %v784_v57 = vmul.f32 -0.99326205, %v648_v54  ;;  %v1239_v49 = vpop.eup %1238  ;;  %v874_v48 = vsub.f32 %v812_v62, %v844_v63  ;;  %v908_v50 = vmul.f32 %v1833_v31, %v892_v28 }
 0x2fb   :  { %1256 = vlog2.f32 %v646_v32  ;;  %v1241_v21 = vpop.eup %1240  ;;  %v766_v42 = vsub.f32 %v740_v5, %v718_v60  ;;  %v725_v56 = vmul.f32 124.0, %v1239_v49 }
 0x2fc   :  { %1258 = vlog2.f32 %v802_v22  ;;  %v800_v35 = vadd.f32 %v784_v57, %v768_v40  ;;  %v890_v41 = vadd.f32 5.0, %v874_v48  ;;  %v752_v58 = vpop.xlane.xlu1 %751  ;;  %v1243_v52 = vpop.eup %1242  ;;  %v927_v31 = vsel %vm921_vm13, %v908_v50, 0.0 }
 0x2fd   :  { %1260 = vlog2.f32 %v648_v54  ;;  %v644_v11 = vpop.xlane.xlu0 %643  ;;  %v1245_v15 = vpop.eup %1244  ;;  %v772_v37 = vsub.f32 %v752_v58, %v724_v18  ;;  %v1970_v48 = vmul.f32 0.6931472, %v1243_v52  ;;  %v726_v60 = vmul.f32 124.0, %v1241_v21 }
 0x2fe   :  { %1262 = vlog2.f32 %v800_v35  ;;  %v782_v34 = vmul.f32 -0.99326205, %v644_v11  ;;  %v906_v32 = vmul.f32 %v1809_v38, %v890_v41  ;;  %v1247_v23 = vpop.eup %1246  ;;  %v925_v38 = vsel %vm921_vm13, %v907_v43, 0.0 }
 0x2ff   :  { %1264 = vlog2.f32 %v644_v11  ;;  %v1249_v53 = vpop.eup %1248  ;;  %v727_v35 = vmul.f32 124.0, %v1958_v30  ;;  %v858_v50 = vmul.f32 0.6931472, %v1247_v23 }
 0x300   :  { %v798_v46 = vadd.f32 %v782_v34, %v766_v42  ;;  %v923_v61 = vsel %vm921_vm13, %v906_v32, 0.0  ;;  %1266 = vlog2.f32 %v1949_v36  ;;  %v754_v1 = vpop.xlane.xlu1 %753  ;;  %v1251_v55 = vpop.eup %1250  ;;  %v830_v34 = vmul.f32 0.6931472, %v1245_v15 }
 0x301   :  { %v656_v8 = vpop.xlane.xlu0 %655  ;;  %v924_v25 = vadd.f32 %v923_v61, %v922_v45  ;;  %v1253_v47 = vpop.eup %1252  ;;  %v850_v59 = vmul.f32 0.6931472, %v1251_v55  ;;  %v773_v57 = vsub.f32 %v754_v1, %v725_v56 }
 0x302   :  { %1268 = vlog2.f32 %v798_v46  ;;  %v788_v26 = vmul.f32 -0.99326205, %v656_v8  ;;  %v822_v63 = vmul.f32 0.6931472, %v1253_v47 }
 0x303   :  { %1270 = vpow2.f32 %v711_v14  ;;  %v926_v17 = vadd.f32 %v925_v38, %v924_v25  ;;  %v826_v14 = vmul.f32 0.6931472, %v1249_v53 }
 0x304   :  { %v1255_v2 = vpop.eup %1254  ;;  %v804_v36 = vadd.f32 %v788_v26, %v772_v37  ;;  %v756_v7 = vpop.xlane.xlu1 %755  ;;  %1272 = vlog2.f32 %v656_v8 }
 0x305   :  { %v1257_v51 = vpop.eup %1256  ;;  %v818_v22 = vmul.f32 0.6931472, %v1255_v2  ;;  %v658_v16 = vpop.xlane.xlu0 %657  ;;  %v928_v5 = vadd.f32 %v927_v31, %v926_v17  ;;  %v881_v53 = vsub.f32 %v826_v14, %v858_v50  ;;  %v774_v2 = vsub.f32 %v756_v7, %v726_v60 }
 0x306   :  { %v1259_v62 = vpop.eup %1258  ;;  %1274 = vlog2.f32 %v804_v36  ;;  %v789_v20 = vmul.f32 -0.99326205, %v658_v16  ;;  %v854_v49 = vmul.f32 0.6931472, %v1257_v51  ;;  %v883_v51 = vsub.f32 %v830_v34, %v1970_v48 }
 0x307   :  { %v1261_v54 = vpop.eup %1260  ;;  %v877_v40 = vsub.f32 %v818_v22, %v850_v59  ;;  %1276 = vlog2.f32 %v658_v16  ;;  %v828_v30 = vmul.f32 0.6931472, %v1259_v62 }
 0x308   :  { %v1263_v27 = vpop.eup %1262  ;;  %v805_v58 = vadd.f32 %v789_v20, %v773_v57  ;;  %v758_v11 = vpop.xlane.xlu1 %757  ;;  %v879_v46 = vsub.f32 %v822_v63, %v854_v49  ;;  %v856_v45 = vmul.f32 0.6931472, %v1261_v54  ;;  %v897_v54 = vadd.f32 5.0, %v881_v53 }
 0x309   :  { %v1265_v13 = vpop.eup %1264  ;;  %v893_v28 = vadd.f32 5.0, %v877_v40  ;;  %v824_v41 = vmul.f32 0.6931472, %v1263_v27  ;;  %v662_v42 = vpop.xlane.xlu0 %661  ;;  %v775_v43 = vsub.f32 %v758_v11, %v727_v35  ;;  %v899_v14 = vadd.f32 5.0, %v883_v51 }
 0x30a   :  { %v791_v32 = vmul.f32 -0.99326205, %v662_v42  ;;  %v1267_v18 = vpop.eup %1266  ;;  %1278 = vlog2.f32 %v805_v58  ;;  %v852_v61 = vmul.f32 0.6931472, %v1265_v13  ;;  %v895_v26 = vadd.f32 5.0, %v879_v46 }
 0x30b   :  { %v909_v52 = vmul.f32 %v1840_v24, %v893_v28  ;;  %v880_v25 = vsub.f32 %v824_v41, %v856_v45  ;;  %1280 = vlog2.f32 %v662_v42  ;;  %v860_v38 = vmul.f32 0.6931472, %v1267_v18 }
 0x30c   :  { %v1269_v21 = vpop.eup %1268  ;;  %v807_v1 = vadd.f32 %v791_v32, %v775_v43  ;;  %v760_v17 = vpop.xlane.xlu1 %759  ;;  %v911_v7 = vmul.f32 %v1856_v29, %v895_v26  ;;  %v913_v29 = vmul.f32 %v1870_v12, %v897_v54 }
 0x30d   :  { %v1271_v8 = vpop.eup %1270  ;;  %v929_v55 = vsel %vm921_vm13, %v909_v52, 0.0  ;;  %v820_v47 = vmul.f32 0.6931472, %v1269_v21  ;;  %v660_v15 = vpop.xlane.xlu0 %659  ;;  %v882_v31 = vsub.f32 %v828_v30, %v860_v38  ;;  %v896_v36 = vadd.f32 5.0, %v880_v25 }
 0x30e   :  { %v930_v37 = vadd.f32 %v929_v55, %v928_v5  ;;  %1282 = vlog2.f32 %v807_v1  ;;  %v790_v56 = vmul.f32 -0.99326205, %v660_v15  ;;  %v1273_v23 = vpop.eup %1272  ;;  %v728_v22 = vmul.f32 124.0, %v1271_v8 }
 0x30f   :  { %v878_v24 = vsub.f32 %v820_v47, %v852_v61  ;;  %1284 = vlog2.f32 %v660_v15  ;;  %v864_v49 = vmul.f32 0.6931472, %v1273_v23  ;;  %v898_v35 = vadd.f32 5.0, %v882_v31 }
 0x310   :  { %v1275_v59 = vpop.eup %1274  ;;  %v806_v62 = vadd.f32 %v790_v56, %v774_v2  ;;  %v776_v5 = vsub.f32 %v760_v17, %v728_v22  ;;  %v912_v13 = vmul.f32 %v1863_v44, %v896_v36  ;;  %v915_v61 = vmul.f32 %v1884_v0, %v899_v14 }
 0x311   :  { %v894_v16 = vadd.f32 5.0, %v878_v24  ;;  %v664_v63 = vpop.xlane.xlu0 %663  ;;  %v832_v40 = vmul.f32 0.6931472, %v1275_v59  ;;  %v1277_v20 = vpop.eup %1276  ;;  %v914_v46 = vmul.f32 %v1877_v10, %v898_v35  ;;  %v937_v1 = vsel %vm921_vm13, %v913_v29, 0.0 }
 0x312   :  { %v792_v57 = vmul.f32 -0.99326205, %v664_v63  ;;  %1286 = vlog2.f32 %v806_v62  ;;  %v866_v42 = vmul.f32 0.6931472, %v1277_v20  ;;  %v935_v44 = vsel %vm921_vm13, %v912_v13, 0.0 }
 0x313   :  { %v910_v27 = vmul.f32 %v1848_v19, %v894_v16  ;;  %1288 = vlog2.f32 %v664_v63  ;;  %v884_v41 = vsub.f32 %v832_v40, %v864_v49  ;;  %v933_v19 = vsel %vm921_vm13, %v911_v7, 0.0 }
 0x314   :  { %v808_v48 = vadd.f32 %v792_v57, %v776_v5  ;;  %v1279_v60 = vpop.eup %1278  ;;  %v939_v47 = vsel %vm921_vm13, %v914_v46, 0.0  ;;  %v941_v26 = vsel %vm921_vm13, %v915_v61, 0.0 }
 0x315   :  { %v931_v28 = vsel %vm921_vm13, %v910_v27, 0.0  ;;  %v834_v11 = vmul.f32 0.6931472, %v1279_v60  ;;  %v1281_v34 = vpop.eup %1280  ;;  %v900_v52 = vadd.f32 5.0, %v884_v41 }
 0x316   :  { %v932_v58 = vadd.f32 %v931_v28, %v930_v37  ;;  %1290 = vlog2.f32 %v808_v48  ;;  %v870_v50 = vmul.f32 0.6931472, %v1281_v34 }
 0x317   :  { %v885_v18 = vsub.f32 %v834_v11, %v866_v42  ;;  %v916_v15 = vmul.f32 %v1891_v4, %v900_v52 }
 0x318   :  { %v1283_v43 = vpop.eup %1282  ;;  %v934_v32 = vadd.f32 %v933_v19, %v932_v58 }
 0x319   :  { %v838_v45 = vmul.f32 0.6931472, %v1283_v43  ;;  %v1285_v30 = vpop.eup %1284  ;;  %v901_v8 = vadd.f32 5.0, %v885_v18  ;;  %v943_v31 = vsel %vm921_vm13, %v916_v15, 0.0 }
 0x31a   :  { %v936_v21 = vadd.f32 %v935_v44, %v934_v32  ;;  %v868_v38 = vmul.f32 0.6931472, %v1285_v30 }
 0x31b   :  { %v887_v12 = vsub.f32 %v838_v45, %v870_v50  ;;  %v917_v24 = vmul.f32 %v1898_v6, %v901_v8 }
 0x31c   :  { %v938_v55 = vadd.f32 %v937_v1, %v936_v21  ;;  %v1287_v25 = vpop.eup %1286 }
 0x31d   :  { %v1289_v10 = vpop.eup %1288  ;;  %v836_v53 = vmul.f32 0.6931472, %v1287_v25  ;;  %v903_v0 = vadd.f32 5.0, %v887_v12  ;;  %v945_v4 = vsel %vm921_vm13, %v917_v24, 0.0 }
 0x31e   :  { %v940_v37 = vadd.f32 %v939_v47, %v938_v55  ;;  %v872_v51 = vmul.f32 0.6931472, %v1289_v10 }
 0x31f   :  { %v886_v17 = vsub.f32 %v836_v53, %v868_v38  ;;  %v919_v62 = vmul.f32 %v1912_v33, %v903_v0 }
 0x320   :  { %v1291_v2 = vpop.eup %1290  ;;  %v942_v56 = vadd.f32 %v941_v26, %v940_v37 }
 0x321   :  { %v840_v23 = vmul.f32 0.6931472, %v1291_v2  ;;  %v902_v22 = vadd.f32 5.0, %v886_v17  ;;  %v949_v57 = vsel %vm921_vm13, %v919_v62, 0.0  ;;  %v994_v49 = vpop.xlane.xlu1 %993 }
 0x322   :  { %v944_v59 = vadd.f32 %v943_v31, %v942_v56  ;;  %v995_v48 = vrot.slane %v994_v49, 4 }
 0x323   :  { %v888_v36 = vsub.f32 %v840_v23, %v872_v51  ;;  %v918_v16 = vmul.f32 %v1903_v9, %v902_v22 }
 0x324   :  { %v946_v63 = vadd.f32 %v945_v4, %v944_v59  ;;  %v996_v60 = vadd.f32 %v995_v48, %v994_v49 }
 0x325   :  { %v904_v54 = vadd.f32 5.0, %v888_v36  ;;  %v947_v6 = vsel %vm921_vm13, %v918_v16, 0.0 }
 0x326   :  { %v948_v5 = vadd.f32 %v947_v6, %v946_v63  ;;  %v997_v9 = vrot.slane %v996_v60, 2 }
 0x327   :  { %v920_v40 = vmul.f32 %v1917_v3, %v904_v54 }
 0x328   :  { %v950_v20 = vadd.f32 %v949_v57, %v948_v5  ;;  %v998_v28 = vadd.f32 %v997_v9, %v996_v60 }
 0x329   :  { %v951_v7 = vsel %vm921_vm13, %v920_v40, 0.0 }
 0x32a   :  { %v952_v27 = vadd.f32 %v951_v7, %v950_v20  ;;  %v999_v11 = vrot.slane %v998_v28, 1 }
 0x32c   :  { %953 = vadd.xlane.f32.xlu0 %v952_v27  ;;  %v1000_v34 = vadd.f32 %v999_v11, %v998_v28 }
 0x3b9   :  { %v954_v35 = vpop.xlane.xlu0 %953 }
 0x3ba   :  { %v955_v33 = vrot.slane %v954_v35, 4 }
 0x3bc   :  { %v956_v13 = vadd.f32 %v955_v33, %v954_v35 }
 0x3be   :  { %v957_v41 = vrot.slane %v956_v13, 2 }
 0x3c0   :  { %v958_v58 = vadd.f32 %v957_v41, %v956_v13 }
 0x3c2   :  { %v959_v3 = vrot.slane %v958_v58, 1 }
 0x3c4   :  { %v960_v42 = vadd.f32 %v959_v3, %v958_v58 }
 0x3c6   :  { %1112 = vpush %v960_v42 }
 0x3c7   :  { %1114 = vpush %v1000_v34 }
 0x3f7   :  { %s1113_s1 = spop %1112 }
 0x3f8   :  { %v1006_v14 = vstv %s1113_s1  ;;  %s1115_s6 = spop %1114 }
 0x3f9   :  { %v1004_v29 = vstv %s1115_s6 }
 0x3fa   :  { %v1005_v19 = vsel %vm1003_vm7, %v1004_v29, 0.0 }
 0x3fb   :  { %v1007_v43 = vsel %vm1002_vm8, %v1006_v14, %v1005_v19 }
 0x3fc   :  { %1008 = vst [vmem:[#allocation5] sm:$0x1] %v1007_v43 }
 0x3fd   :  { %1325 = shalt.err (!%p1322_p12)
}
 0x3fe   :  { %s1326_s11 = scalar_lea.hbm %s2015_s3, 16 }
 0x3ff   :  { %p1327_p13 = scmp.ne.s32.totalorder %s2015_s3, %s1326_s11  ;;  %p1330_p0 = scmp.lt.u32.totalorder %s1326_s11, %s2015_s3 }
 0x401   :  { %p1332_p1 = pnand %p1330_p0, %p1327_p13 }
 0x403   :  { %1335 = shalt.err (!%p1332_p1)
}
 0x404   :  { %1018 = dma.vmem_to_hbm [thread:$0]  %s1016_s5, 16, %s2015_s3, [#allocation4]  }
 0x405   :  { %1338 = dma.done.wait [#allocation4], 16  }
 0x406   :  { %1339 = vsyncadd [#allocation4], 4294967280 }
 0x407   :  { %1022 = vsyncpa [#allocation3], 1 }
 0x408   :  { %1023 = vsyncpa [#allocation4], 1 }

</bundles_post_ra>
